<compile_context>
chip_gen: v7x
topology: tpu7x:2x2x1
jax: 0.10.0
libtpu: 0.0.40
codegen_flags: <defaults>
</compile_context>

<pallas_src>
import functools

import jax
import jax.numpy as jnp
from jax.experimental import pallas as pl
from jax.experimental.pallas import tpu as pltpu


def _optnc_kernel(x_ref,
                  hw0_ref, hb0_ref, hw1_ref, hb1_ref,
                  bw0_ref, bb0_ref, bw1_ref, bb1_ref,
                  ow_ref, ob_ref,
                  out_ref, *, mm_dtype):
    # x tile: (F, bm) feature-major, batch on lanes, already bf16 from the producer.
    x = x_ref[...]
    if x.dtype != mm_dtype:
        x = x.astype(mm_dtype)

    # ---- head layer 1: both branches in ONE matmul -------------------------
    # hw0 is block-diagonal [[W1, 0], [0, W1]] of shape (2*h0, 2*Xshape):
    # rows [0:h0] = left branch, rows [h0:2*h0] = right branch.
    a = jnp.dot(hw0_ref[...], x,
                preferred_element_type=jnp.float32)        # (2*h0, bm) f32
    a = jnp.maximum(a + hb0_ref[...], 0.0)                 # bias col (2*h0, 1)
    # dropout (eval mode) == identity

    # ---- head layer 2: block-diagonal again ---------------------------------
    h = jnp.dot(hw1_ref[...], a.astype(mm_dtype),
                preferred_element_type=jnp.float32)        # (2*h1, bm) f32
    h = jnp.maximum(h + hb1_ref[...], 0.0)

    # ---- body layer 0 with 'subtract' combine folded in ---------------------
    # bw0 is packed as [W_b0, -W_b0] of shape (b0, 2*h1), so this matmul
    # computes W_b0 @ left - W_b0 @ right directly.
    t = jnp.dot(bw0_ref[...], h.astype(mm_dtype),
                preferred_element_type=jnp.float32)        # (b0, bm)
    t = jnp.maximum(t + bb0_ref[...], 0.0)

    # ---- body layer 1 --------------------------------------------------------
    t = jnp.dot(bw1_ref[...], t.astype(mm_dtype),
                preferred_element_type=jnp.float32)        # (b1, bm)
    t = jnp.maximum(t + bb1_ref[...], 0.0)

    # ---- output head: Linear(b1, 1) as a (1, b1) @ (b1, bm) matmul ----------
    logits = jnp.dot(ow_ref[...], t,
                     preferred_element_type=jnp.float32) + ob_ref[...]   # (1, bm)
    out_ref[...] = jax.nn.sigmoid(logits).astype(out_ref.dtype)          # lane-dense


def prepare_params(params, *, mm_dtype=jnp.bfloat16):
    """Pack torch-layout params for the kernel.

    params = [(W, b), ...] for [head0, head1, body0, body1, out] with W of
    shape (out_features, in_features), b of shape (out_features,)
    (torch.nn.Linear layout).
    """
    (w_h0, b_h0), (w_h1, b_h1), (w_b0, b_b0), (w_b1, b_b1), (w_o, b_o) = params

    z0 = jnp.zeros_like(w_h0)
    hw0 = jnp.block([[w_h0, z0], [z0, w_h0]]).astype(mm_dtype)      # (2*h0, 2*Xshape)
    hb0 = jnp.concatenate([b_h0, b_h0]).reshape(-1, 1).astype(jnp.float32)

    z1 = jnp.zeros_like(w_h1)
    hw1 = jnp.block([[w_h1, z1], [z1, w_h1]]).astype(mm_dtype)      # (2*h1, 2*h0)
    hb1 = jnp.concatenate([b_h1, b_h1]).reshape(-1, 1).astype(jnp.float32)

    # 'subtract' combine folded into body layer 0.
    bw0 = jnp.concatenate([w_b0, -w_b0], axis=1).astype(mm_dtype)   # (b0, 2*h1)
    bb0 = b_b0.reshape(-1, 1).astype(jnp.float32)
    bw1 = w_b1.astype(mm_dtype)                                     # (b1, b0)
    bb1 = b_b1.reshape(-1, 1).astype(jnp.float32)

    ow = w_o.reshape(1, -1).astype(jnp.float32)                     # (1, b1) row
    ob = b_o.reshape(1, 1).astype(jnp.float32)                      # (1, 1)
    return (hw0, hb0, hw1, hb1, bw0, bb0, bw1, bb1, ow, ob)


def prepare_input(x, *, mm_dtype=jnp.bfloat16):
    """(B, 2*Xshape) float -> feature-major (2*Xshape, B) bf16 for the kernel.

    Done producer-side so the kernel's only large HBM stream is bf16 and
    needs no in-kernel transpose.
    """
    return jnp.asarray(x).astype(mm_dtype).T


def _choose_tiling(B, bm=None, *, max_bm=2048):
    """Pick (bm, B_pad): bm a multiple of 256 dividing B_pad exactly (no ragged
    trailing block), capped at max_bm, and giving >= 2 grid steps whenever
    possible so both v7x TensorCores get work under ("parallel",)."""
    if bm is not None:
        return bm, pl.cdiv(B, bm) * bm
    B_pad = max(256, pl.cdiv(B, 256) * 256)
    if B_pad == 256:
        return 256, B_pad
    cap = min(max_bm, B_pad // 2)        # >= 256 and guarantees >= 2 grid steps
    best = 256
    cand = 256
    while cand <= cap:
        if B_pad % cand == 0:
            best = cand
        cand += 256
    return best, B_pad


def optnc_forward(xt, packed, *, bm=None, mm_dtype=jnp.bfloat16):
    """xt: feature-major (2*Xshape, B) bf16 (from prepare_input).
    packed: output of prepare_params.  Returns (B, 1) float32 probabilities."""
    F, B = xt.shape
    bm_, B_pad = _choose_tiling(B, bm)
    if B_pad != B:
        xt = jnp.pad(xt, ((0, 0), (0, B_pad - B)))   # zero-padded lanes, sliced off below
    n_blocks = B_pad // bm_

    def const_spec(p):
        # Grid-invariant index map: weights/biases stay VMEM-resident, never re-DMAed.
        return pl.BlockSpec(p.shape, lambda i: (0,) * p.ndim)

    in_specs = [pl.BlockSpec((F, bm_), lambda i: (0, i))]   # bf16 x stream
    in_specs += [const_spec(p) for p in packed]

    out = pl.pallas_call(
        functools.partial(_optnc_kernel, mm_dtype=mm_dtype),
        out_shape=jax.ShapeDtypeStruct((1, B_pad), jnp.float32),
        grid=(n_blocks,),
        in_specs=in_specs,
        out_specs=pl.BlockSpec((1, bm_), lambda i: (0, i)),   # lane-dense output
        compiler_params=pltpu.CompilerParams(
            dimension_semantics=("parallel",)),
    )(xt, *packed)
    return out[:, :B].reshape(B, 1)


def reference_forward(x, params, *, mm_dtype=jnp.bfloat16):
    """Pure-JAX reference mirroring the kernel's numerics (bf16 matmul operands,
    f32 accumulation/elementwise, subtract folded into body layer 0) in the
    original PyTorch orientation."""
    (w_h0, b_h0), (w_h1, b_h1), (w_b0, b_b0), (w_b1, b_b1), (w_o, b_o) = params
    d = x.shape[1] // 2
    left, right = x[:, :d], x[:, d:]

    def lin_relu(v, w, b):
        y = jnp.dot(v.astype(mm_dtype), w.astype(mm_dtype).T,
                    preferred_element_type=jnp.float32) + b
        return jnp.maximum(y, 0.0)

    for w, b in ((w_h0, b_h0), (w_h1, b_h1)):
        left = lin_relu(left, w, b)
        right = lin_relu(right, w, b)
    # 'subtract' combine folded into body layer 0 (mathematically identical to
    # relu(W_b0 @ (left - right) + b_b0); mirrors the kernel's bf16 rounding).
    wb0 = w_b0.astype(mm_dtype)
    res = (jnp.dot(left.astype(mm_dtype), wb0.T, preferred_element_type=jnp.float32)
           - jnp.dot(right.astype(mm_dtype), wb0.T, preferred_element_type=jnp.float32)
           + b_b0)
    res = jnp.maximum(res, 0.0)
    res = lin_relu(res, w_b1, b_b1)
    logits = jnp.dot(res, w_o.astype(jnp.float32).T) + b_o
    return jax.nn.sigmoid(logits)


if __name__ == "__main__":
    # OptNCMiner(Xshape=32, headshape=[64, 32], bodyshape=[32, 16],
    #            combine_mode='subtract'), eval mode (dropout = identity).
    Xshape = 32
    headshape = [64, 32]
    bodyshape = [32, 16]
    B = 1024          # -> bm=512, 2 grid steps (keeps both v7x TensorCores busy)

    key = jax.random.PRNGKey(0)
    keys = jax.random.split(key, 6)

    def init_linear(k, fan_in, fan_out):
        # torch.nn.Linear-style uniform(-1/sqrt(fan_in), 1/sqrt(fan_in))
        kw, kb = jax.random.split(k)
        bound = 1.0 / jnp.sqrt(float(fan_in))
        w = jax.random.uniform(kw, (fan_out, fan_in), jnp.float32, -bound, bound)
        b = jax.random.uniform(kb, (fan_out,), jnp.float32, -bound, bound)
        return w, b

    params = [
        init_linear(keys[0], Xshape, headshape[0]),
        init_linear(keys[1], headshape[0], headshape[1]),
        init_linear(keys[2], headshape[1], bodyshape[0]),
        init_linear(keys[3], bodyshape[0], bodyshape[1]),
        init_linear(keys[4], bodyshape[1], 1),
    ]
    x = jax.random.normal(keys[5], (B, 2 * Xshape), jnp.float32)

    packed = prepare_params(params, mm_dtype=jnp.bfloat16)
    xt = prepare_input(x, mm_dtype=jnp.bfloat16)         # bf16, feature-major
    out = optnc_forward(xt, packed, mm_dtype=jnp.bfloat16)
    out = jax.block_until_ready(out)

    ref = reference_forward(x, params, mm_dtype=jnp.bfloat16)
    assert out.shape == (B, 1)
    max_err = float(jnp.max(jnp.abs(out - ref)))
    assert jnp.allclose(out, ref, atol=2e-3, rtol=2e-3), max_err

    print("KERNEL_OK")
</pallas_src>

<mosaic_0001>
module attributes {stable_mosaic.version = 11 : i64} {
  func.func @_optnc_kernel(%arg0: i32, %arg1: memref<64x512xbf16, #tpu.memory_space<vmem>>, %arg2: memref<128x64xbf16, #tpu.memory_space<vmem>>, %arg3: memref<128x1xf32, #tpu.memory_space<vmem>>, %arg4: memref<64x128xbf16, #tpu.memory_space<vmem>>, %arg5: memref<64x1xf32, #tpu.memory_space<vmem>>, %arg6: memref<32x64xbf16, #tpu.memory_space<vmem>>, %arg7: memref<32x1xf32, #tpu.memory_space<vmem>>, %arg8: memref<16x32xbf16, #tpu.memory_space<vmem>>, %arg9: memref<16x1xf32, #tpu.memory_space<vmem>>, %arg10: memref<1x16xf32, #tpu.memory_space<vmem>>, %arg11: memref<1x1xf32, #tpu.memory_space<vmem>>, %arg12: memref<1x512xf32, #tpu.memory_space<vmem>>) attributes {dimension_semantics = [#tpu.dimension_semantics<parallel>], iteration_bounds = array<i64: 2>, scalar_prefetch = 0 : i64, scratch_operands = 0 : i64, tpu.core_type = #tpu.core_type<tc>, window_params = [{transform_indices = @transform_0, window_bounds = array<i64: 64, 512>}, {pipeline_mode = #tpu.pipeline_mode<synchronous>, transform_indices = @transform_1, window_bounds = array<i64: 128, 64>}, {pipeline_mode = #tpu.pipeline_mode<synchronous>, transform_indices = @transform_2, window_bounds = array<i64: 128, 1>}, {pipeline_mode = #tpu.pipeline_mode<synchronous>, transform_indices = @transform_3, window_bounds = array<i64: 64, 128>}, {pipeline_mode = #tpu.pipeline_mode<synchronous>, transform_indices = @transform_4, window_bounds = array<i64: 64, 1>}, {pipeline_mode = #tpu.pipeline_mode<synchronous>, transform_indices = @transform_5, window_bounds = array<i64: 32, 64>}, {pipeline_mode = #tpu.pipeline_mode<synchronous>, transform_indices = @transform_6, window_bounds = array<i64: 32, 1>}, {pipeline_mode = #tpu.pipeline_mode<synchronous>, transform_indices = @transform_7, window_bounds = array<i64: 16, 32>}, {pipeline_mode = #tpu.pipeline_mode<synchronous>, transform_indices = @transform_8, window_bounds = array<i64: 16, 1>}, {pipeline_mode = #tpu.pipeline_mode<synchronous>, transform_indices = @transform_9, window_bounds = array<i64: 1, 16>}, {pipeline_mode = #tpu.pipeline_mode<synchronous>, transform_indices = @transform_10, window_bounds = array<i64: 1, 1>}, {transform_indices = @transform_11, window_bounds = array<i64: 1, 512>}]} {
    %c0 = arith.constant 0 : index
    %c0_0 = arith.constant 0 : index
    %0 = vector.load %arg1[%c0, %c0_0] : memref<64x512xbf16, #tpu.memory_space<vmem>>, vector<64x512xbf16>
    %c0_1 = arith.constant 0 : index
    %c0_2 = arith.constant 0 : index
    %1 = vector.load %arg2[%c0_1, %c0_2] : memref<128x64xbf16, #tpu.memory_space<vmem>>, vector<128x64xbf16>
    %cst = arith.constant dense<0.000000e+00> : vector<128x512xf32>
    %2 = tpu.matmul %1, %0, %cst {dimension_numbers = #tpu.dot_dimension_numbers<[1], [0], [0], [1], [0, 0, 1, 1], [], []>} : vector<128x64xbf16>, vector<64x512xbf16>, vector<128x512xf32> -> vector<128x512xf32>
    %c0_3 = arith.constant 0 : index
    %c0_4 = arith.constant 0 : index
    %3 = vector.load %arg3[%c0_3, %c0_4] : memref<128x1xf32, #tpu.memory_space<vmem>>, vector<128x1xf32>
    %4 = vector.broadcast %3 : vector<128x1xf32> to vector<128x512xf32>
    %5 = arith.addf %2, %4 : vector<128x512xf32>
    %cst_5 = arith.constant 0.000000e+00 : f32
    %6 = vector.broadcast %cst_5 : f32 to vector<128x512xf32>
    %7 = arith.maximumf %5, %6 : vector<128x512xf32>
    %c0_6 = arith.constant 0 : index
    %c0_7 = arith.constant 0 : index
    %8 = vector.load %arg4[%c0_6, %c0_7] : memref<64x128xbf16, #tpu.memory_space<vmem>>, vector<64x128xbf16>
    %9 = arith.truncf %7 : vector<128x512xf32> to vector<128x512xbf16>
    %cst_8 = arith.constant dense<0.000000e+00> : vector<64x512xf32>
    %10 = tpu.matmul %8, %9, %cst_8 {dimension_numbers = #tpu.dot_dimension_numbers<[1], [0], [0], [1], [0, 0, 1, 1], [], []>} : vector<64x128xbf16>, vector<128x512xbf16>, vector<64x512xf32> -> vector<64x512xf32>
    %c0_9 = arith.constant 0 : index
    %c0_10 = arith.constant 0 : index
    %11 = vector.load %arg5[%c0_9, %c0_10] : memref<64x1xf32, #tpu.memory_space<vmem>>, vector<64x1xf32>
    %12 = vector.broadcast %11 : vector<64x1xf32> to vector<64x512xf32>
    %13 = arith.addf %10, %12 : vector<64x512xf32>
    %cst_11 = arith.constant 0.000000e+00 : f32
    %14 = vector.broadcast %cst_11 : f32 to vector<64x512xf32>
    %15 = arith.maximumf %13, %14 : vector<64x512xf32>
    %c0_12 = arith.constant 0 : index
    %c0_13 = arith.constant 0 : index
    %16 = vector.load %arg6[%c0_12, %c0_13] : memref<32x64xbf16, #tpu.memory_space<vmem>>, vector<32x64xbf16>
    %17 = arith.truncf %15 : vector<64x512xf32> to vector<64x512xbf16>
    %cst_14 = arith.constant dense<0.000000e+00> : vector<32x512xf32>
    %18 = tpu.matmul %16, %17, %cst_14 {dimension_numbers = #tpu.dot_dimension_numbers<[1], [0], [0], [1], [0, 0, 1, 1], [], []>} : vector<32x64xbf16>, vector<64x512xbf16>, vector<32x512xf32> -> vector<32x512xf32>
    %c0_15 = arith.constant 0 : index
    %c0_16 = arith.constant 0 : index
    %19 = vector.load %arg7[%c0_15, %c0_16] : memref<32x1xf32, #tpu.memory_space<vmem>>, vector<32x1xf32>
    %20 = vector.broadcast %19 : vector<32x1xf32> to vector<32x512xf32>
    %21 = arith.addf %18, %20 : vector<32x512xf32>
    %cst_17 = arith.constant 0.000000e+00 : f32
    %22 = vector.broadcast %cst_17 : f32 to vector<32x512xf32>
    %23 = arith.maximumf %21, %22 : vector<32x512xf32>
    %c0_18 = arith.constant 0 : index
    %c0_19 = arith.constant 0 : index
    %24 = vector.load %arg8[%c0_18, %c0_19] : memref<16x32xbf16, #tpu.memory_space<vmem>>, vector<16x32xbf16>
    %25 = arith.truncf %23 : vector<32x512xf32> to vector<32x512xbf16>
    %cst_20 = arith.constant dense<0.000000e+00> : vector<16x512xf32>
    %26 = tpu.matmul %24, %25, %cst_20 {dimension_numbers = #tpu.dot_dimension_numbers<[1], [0], [0], [1], [0, 0, 1, 1], [], []>} : vector<16x32xbf16>, vector<32x512xbf16>, vector<16x512xf32> -> vector<16x512xf32>
    %c0_21 = arith.constant 0 : index
    %c0_22 = arith.constant 0 : index
    %27 = vector.load %arg9[%c0_21, %c0_22] : memref<16x1xf32, #tpu.memory_space<vmem>>, vector<16x1xf32>
    %28 = vector.broadcast %27 : vector<16x1xf32> to vector<16x512xf32>
    %29 = arith.addf %26, %28 : vector<16x512xf32>
    %cst_23 = arith.constant 0.000000e+00 : f32
    %30 = vector.broadcast %cst_23 : f32 to vector<16x512xf32>
    %31 = arith.maximumf %29, %30 : vector<16x512xf32>
    %c0_24 = arith.constant 0 : index
    %c0_25 = arith.constant 0 : index
    %32 = vector.load %arg10[%c0_24, %c0_25] : memref<1x16xf32, #tpu.memory_space<vmem>>, vector<1x16xf32>
    %cst_26 = arith.constant dense<0.000000e+00> : vector<1x512xf32>
    %33 = tpu.matmul %32, %31, %cst_26 {dimension_numbers = #tpu.dot_dimension_numbers<[1], [0], [0], [1], [0, 0, 1, 1], [], []>} : vector<1x16xf32>, vector<16x512xf32>, vector<1x512xf32> -> vector<1x512xf32>
    %c0_27 = arith.constant 0 : index
    %c0_28 = arith.constant 0 : index
    %34 = vector.load %arg11[%c0_27, %c0_28] : memref<1x1xf32, #tpu.memory_space<vmem>>, vector<1x1xf32>
    %35 = vector.broadcast %34 : vector<1x1xf32> to vector<1x512xf32>
    %36 = arith.addf %33, %35 : vector<1x512xf32>
    %37 = arith.negf %36 : vector<1x512xf32>
    %38 = math.exp %37 : vector<1x512xf32>
    %cst_29 = arith.constant 1.000000e+00 : f32
    %39 = vector.broadcast %cst_29 : f32 to vector<1x512xf32>
    %40 = arith.addf %39, %38 : vector<1x512xf32>
    %41 = arith.divf %39, %40 : vector<1x512xf32>
    %c0_30 = arith.constant 0 : index
    %c0_31 = arith.constant 0 : index
    %42 = vector.load %arg12[%c0_30, %c0_31] : memref<1x512xf32, #tpu.memory_space<vmem>>, vector<1x512xf32>
    tpu.vector_store %arg12[%c0_30, %c0_31], %41 {strides = array<i32>} : memref<1x512xf32, #tpu.memory_space<vmem>>, vector<1x512xf32>,
    return
  }
  func.func @transform_0(%arg0: i32) -> (i32, i32) {
    %c0_i32 = arith.constant 0 : i32
    %c0_i32_0 = arith.constant 0 : i32
    return %c0_i32, %arg0 : i32, i32
  }
  func.func @transform_1(%arg0: i32) -> (i32, i32) {
    %c0_i32 = arith.constant 0 : i32
    %c0_i32_0 = arith.constant 0 : i32
    %c0_i32_1 = arith.constant 0 : i32
    return %c0_i32, %c0_i32_0 : i32, i32
  }
  func.func @transform_2(%arg0: i32) -> (i32, i32) {
    %c0_i32 = arith.constant 0 : i32
    %c0_i32_0 = arith.constant 0 : i32
    %c0_i32_1 = arith.constant 0 : i32
    return %c0_i32, %c0_i32_0 : i32, i32
  }
  func.func @transform_3(%arg0: i32) -> (i32, i32) {
    %c0_i32 = arith.constant 0 : i32
    %c0_i32_0 = arith.constant 0 : i32
    %c0_i32_1 = arith.constant 0 : i32
    return %c0_i32, %c0_i32_0 : i32, i32
  }
  func.func @transform_4(%arg0: i32) -> (i32, i32) {
    %c0_i32 = arith.constant 0 : i32
    %c0_i32_0 = arith.constant 0 : i32
    %c0_i32_1 = arith.constant 0 : i32
    return %c0_i32, %c0_i32_0 : i32, i32
  }
  func.func @transform_5(%arg0: i32) -> (i32, i32) {
    %c0_i32 = arith.constant 0 : i32
    %c0_i32_0 = arith.constant 0 : i32
    %c0_i32_1 = arith.constant 0 : i32
    return %c0_i32, %c0_i32_0 : i32, i32
  }
  func.func @transform_6(%arg0: i32) -> (i32, i32) {
    %c0_i32 = arith.constant 0 : i32
    %c0_i32_0 = arith.constant 0 : i32
    %c0_i32_1 = arith.constant 0 : i32
    return %c0_i32, %c0_i32_0 : i32, i32
  }
  func.func @transform_7(%arg0: i32) -> (i32, i32) {
    %c0_i32 = arith.constant 0 : i32
    %c0_i32_0 = arith.constant 0 : i32
    %c0_i32_1 = arith.constant 0 : i32
    return %c0_i32, %c0_i32_0 : i32, i32
  }
  func.func @transform_8(%arg0: i32) -> (i32, i32) {
    %c0_i32 = arith.constant 0 : i32
    %c0_i32_0 = arith.constant 0 : i32
    %c0_i32_1 = arith.constant 0 : i32
    return %c0_i32, %c0_i32_0 : i32, i32
  }
  func.func @transform_9(%arg0: i32) -> (i32, i32) {
    %c0_i32 = arith.constant 0 : i32
    %c0_i32_0 = arith.constant 0 : i32
    %c0_i32_1 = arith.constant 0 : i32
    return %c0_i32, %c0_i32_0 : i32, i32
  }
  func.func @transform_10(%arg0: i32) -> (i32, i32) {
    %c0_i32 = arith.constant 0 : i32
    %c0_i32_0 = arith.constant 0 : i32
    %c0_i32_1 = arith.constant 0 : i32
    return %c0_i32, %c0_i32_0 : i32, i32
  }
  func.func @transform_11(%arg0: i32) -> (i32, i32) {
    %c0_i32 = arith.constant 0 : i32
    %c0_i32_0 = arith.constant 0 : i32
    return %c0_i32, %arg0 : i32, i32
  }
}

</mosaic_0001>

<bundles_post_ra>
// kernel: tpu_custom_call.1
= control target key start
LH: loop header
LB: loop body
LE: loop exit
PB: predicated region body
PF: predicated region fallthrough
CT: control target
= control target key end

     0   :  { %s2526_s0 = inlined_call_operand.vmem [shape: bf16[64,1024], index: 0, kind: input, shape index: {}]   ;;  %s2527_s1 = inlined_call_operand.vmem [shape: bf16[128,64], index: 1, kind: input, shape index: {}]   ;;  %s2528_s2 = inlined_call_operand.vmem [shape: f32[128,1], index: 2, kind: input, shape index: {}]   ;;  %s2529_s3 = inlined_call_operand.vmem [shape: bf16[64,128], index: 3, kind: input, shape index: {}]   ;;  %s2530_s4 = inlined_call_operand.vmem [shape: f32[64,1], index: 4, kind: input, shape index: {}]   ;;  %s2531_s5 = inlined_call_operand.vmem [shape: bf16[32,64], index: 5, kind: input, shape index: {}]   ;;  %s2532_s6 = inlined_call_operand.vmem [shape: f32[32,1], index: 6, kind: input, shape index: {}]   ;;  %s2533_s7 = inlined_call_operand.vmem [shape: bf16[16,32], index: 7, kind: input, shape index: {}]   ;;  %s2534_s8 = inlined_call_operand.vmem [shape: f32[16,1], index: 8, kind: input, shape index: {}]   ;;  %s2535_s9 = inlined_call_operand.vmem [shape: f32[1,16], index: 9, kind: input, shape index: {}]   ;;  %s2536_s10 = inlined_call_operand.<no memory space> [shape: f32[1,1], index: 10, kind: input, shape index: {}]   ;;  %s2537_s11 = inlined_call_operand.hbm [shape: f32[1,1024], index: 11, kind: output, shape index: {}]  }
   0x1   :  { %v16_v0 = vstv %s2536_s10 }
   0x2   :  { %17 = vst [vmem:[#allocation2] sm:$0x1] %v16_v0 }
   0x3   :  { %18 = vsyncpa [#allocation5], 0 }
   0x4   :  { %20 = vsyncpa [#allocation5 + $0x1], 0  ;;  %s2208_s19 = smov 0   ;;  %s2210_s20 = smov 0  }
   0x5   :  { %s2212_s21 = smov 0   ;;  %s2214_s22 = smov 0  }
   0x6 LB: > { %s1894_s10 = sadd.s32 4294967295, %s2139_s22   ;;  %s1895_s23 = sadd.s32 4294967294, %s2139_s22   ;;  %s2139_s22 = sphi %s2214_s22, %s2543_s22   ;;  %s2135_s21 = sphi %s2212_s21, %s2542_s21   ;;  %s2131_s20 = sphi %s2210_s20, %s2541_s20   ;;  %s2127_s19 = sphi %s2208_s19, %s2540_s19  }
   0x7   : > { %s2231_s24 = sadd.s32 1, %s2139_s22   ;;  %s33_s25 = sadd.s32 1, %s2135_s21 }
   0x8   : > { %s30_s26 = ssub.s32 %s2139_s22, %s2231_s24  ;;  %p40_p0 = scmp.ne.s32.totalorder %s2135_s21, %s2131_s20 }
   0x9   : > { %p31_p1 = scmp.eq.s32.totalorder %s30_s26, 0  ;;  %p41_p2 = scmp.eq.s32.totalorder %s2139_s22, 0 }
   0xa   : > { %p280_p3 = scmp.eq.s32.totalorder %s1894_s10, 1  ;;  %p285_p4 = scmp.ne.s32.totalorder %s2131_s20, %s2127_s19 }
   0xb   : > { %s2244_s27 = scalar_select %p31_p1, %s2135_s21, %s33_s25  }
   0xc   : > { %p42_p5 = por %p41_p2, %p40_p0  ;;  %p2246_p6 = por %p280_p3, %p40_p0 }
   0xd   : > { %p286_p7 = scmp.eq.s32.totalorder %s1895_s23, 1  ;;  %p1897_p9 = scmp.ge.s32.totalorder %s2139_s22, 2 }
   0xf   : > { %p2250_p8 = por %p286_p7, %p285_p4  ;;  %332 = sbr.rel (%p1897_p9) target bundleno = 34 (0x22), region = 56 }
  0x16   : > { %335 = sbr.rel (!%p42_p5) target bundleno = 34 (0x22), region = 60  ;;  %s337_s30 = sand.u32 (%p42_p5), 1, %s2135_s21  }
  0x17   : > { %s1968_s12 = sshll.u32 (%p42_p5), %s2139_s22, 4  ;;  %s1898_s13 = sshll.u32 (%p42_p5), %s337_s30, 7 }
  0x18   : > { %s2262_s16 = scalar_lea.vmem (%p42_p5), %s2526_s0, %s1968_s12  ;;  %s339_s17 = scalar_lea.vmem (%p42_p5), [#allocation3], %s1898_s13 }
  0x19   : > { %v355_v1 = vld [vmem:[%s2262_s16] sm:$0xff] (%p42_p5)  ;;  %v357_v2 = vld [vmem:[%s2262_s16 + $0x8] sm:$0xff] (%p42_p5) }
  0x1a   : > { %v359_v3 = vld [vmem:[%s2262_s16 + $0x20] sm:$0xff] (%p42_p5)  ;;  %356 = vst [vmem:[%s339_s17] sm:$0xff] (%p42_p5), %v355_v1  ;;  %358 = vst [vmem:[%s339_s17 + $0x8] sm:$0xff] (%p42_p5), %v357_v2  ;;  %v361_v4 = vld [vmem:[%s2262_s16 + $0x28] sm:$0xff] (%p42_p5) }
  0x1b   : > { %360 = vst [vmem:[%s339_s17 + $0x10] sm:$0xff] (%p42_p5), %v359_v3  ;;  %v363_v5 = vld [vmem:[%s2262_s16 + $0x40] sm:$0xff] (%p42_p5)  ;;  %v365_v6 = vld [vmem:[%s2262_s16 + $0x48] sm:$0xff] (%p42_p5)  ;;  %362 = vst [vmem:[%s339_s17 + $0x18] sm:$0xff] (%p42_p5), %v361_v4 }
  0x1c   : > { %364 = vst [vmem:[%s339_s17 + $0x20] sm:$0xff] (%p42_p5), %v363_v5  ;;  %366 = vst [vmem:[%s339_s17 + $0x28] sm:$0xff] (%p42_p5), %v365_v6  ;;  %v367_v7 = vld [vmem:[%s2262_s16 + $0x60] sm:$0xff] (%p42_p5)  ;;  %v369_v8 = vld [vmem:[%s2262_s16 + $0x68] sm:$0xff] (%p42_p5) }
  0x1d   : > { %v371_v9 = vld [vmem:[%s2262_s16 + $0x80] sm:$0xff]  ;;  %368 = vst [vmem:[%s339_s17 + $0x30] sm:$0xff] %v367_v7  ;;  %370 = vst [vmem:[%s339_s17 + $0x38] sm:$0xff] %v369_v8  ;;  %v373_v10 = vld [vmem:[%s2262_s16 + $0x88] sm:$0xff] }
  0x1e   : > { %372 = vst [vmem:[%s339_s17 + $0x40] sm:$0xff] %v371_v9  ;;  %v375_v11 = vld [vmem:[%s2262_s16 + $0xa0] sm:$0xff]  ;;  %v377_v12 = vld [vmem:[%s2262_s16 + $0xa8] sm:$0xff]  ;;  %374 = vst [vmem:[%s339_s17 + $0x48] sm:$0xff] %v373_v10 }
  0x1f   : > { %376 = vst [vmem:[%s339_s17 + $0x50] sm:$0xff] %v375_v11  ;;  %378 = vst [vmem:[%s339_s17 + $0x58] sm:$0xff] %v377_v12  ;;  %v379_v13 = vld [vmem:[%s2262_s16 + $0xc0] sm:$0xff]  ;;  %v381_v14 = vld [vmem:[%s2262_s16 + $0xc8] sm:$0xff] }
  0x20   : > { %v383_v15 = vld [vmem:[%s2262_s16 + $0xe0] sm:$0xff]  ;;  %380 = vst [vmem:[%s339_s17 + $0x60] sm:$0xff] %v379_v13  ;;  %382 = vst [vmem:[%s339_s17 + $0x68] sm:$0xff] %v381_v14  ;;  %v385_v16 = vld [vmem:[%s2262_s16 + $0xe8] sm:$0xff] }
  0x21   : > { %384 = vst [vmem:[%s339_s17 + $0x70] sm:$0xff] %v383_v15  ;;  %386 = vst [vmem:[%s339_s17 + $0x78] sm:$0xff] %v385_v16 }
  0x22 PF: > { %p1901_p10 = scmp.ge.s32.totalorder %s2139_s22, 1  ;;  %p391_p11 = scmp.lt.s32.totalorder %s2139_s22, 3 }
  0x24   : > { %p392_p12 = pnand %p1901_p10, %p391_p11 }
  0x25   : > { %s2283_s18 = sand.u32 (!%p392_p12), 1, %s2131_s20   ;;  %v2141_v17 = vmov (!%p392_p12), 0   ;;  %v472_v32 = vld [vmem:[%s2528_s2] sm:$0xff] (!%p392_p12)  ;;  %v474_v36 = vld [vmem:[%s2528_s2 + $0x10] sm:$0xff] (!%p392_p12)  ;;  %v473_v37 = vld [vmem:[%s2528_s2 + $0x8] sm:$0xff] (!%p392_p12)  ;;  %vm688_vm0 = vcmask (!%p392_p12), 523264  }
  0x26   : > { %395 = sbr.rel (%p392_p12) target bundleno = 1310 (0x51e), region = 83  ;;  %s1902_s23 = sshll.u32 (!%p392_p12), %s2283_s18, 7  ;;  %745 = vmatprep.mubr.bf16.mxu0 (!%p392_p12), %v2141_v17  ;;  %858 = vmatprep.mubr.bf16.mxu1 (!%p392_p12), %v2141_v17  ;;  %v2046_v35 = vld [vmem:[%s2527_s1] sm:$0xff] (!%p392_p12)   ;;  %v475_v38 = vld [vmem:[%s2528_s2 + $0x18] sm:$0xff] (!%p392_p12)  ;;  %v477_v40 = vld [vmem:[%s2528_s2 + $0x28] sm:$0xff] (!%p392_p12)  ;;  %vm1502_vm1 = vcmask (!%p392_p12), 261120  }
  0x27   : > { %2020 = vset.pattern.permute.xlu0 (!%p392_p12), %v2141_v17  ;;  %2021 = vset.pattern.permute.xlu1 (!%p392_p12), %v2141_v17  ;;  %s400_s25 = scalar_lea.vmem (!%p392_p12), [#allocation3], %s1902_s23  ;;  %v476_v39 = vld [vmem:[%s2528_s2 + $0x20] sm:$0xff] (!%p392_p12)  ;;  %v2047_v41 = vld [vmem:[%s2527_s1 + $0x8] sm:$0xff] (!%p392_p12)   ;;  %v478_v42 = vld [vmem:[%s2528_s2 + $0x30] sm:$0xff] (!%p392_p12)  ;;  %vm1611_vm2 = vcmask (!%p392_p12), 130048   ;;  %s1903_s12 = sshll.u32 (!%p392_p12), %s2283_s18, 2 }
  0x28   : > { %v2022_v18 = vld [vmem:[%s400_s25 + $0x4] ss:$16 sps:$4 sm:$0xff] (!%p392_p12)   ;;  %v2024_v19 = vld [vmem:[%s400_s25 + $0xc] ss:$16 sps:$4 sm:$0xff] (!%p392_p12)   ;;  %v2026_v20 = vld [vmem:[%s400_s25] ss:$16 sps:$4 sm:$0xff] (!%p392_p12)   ;;  %490 = vperm.xlu0 (!%p392_p12), %2020, %v472_v32   ;;  %500 = vperm.xlu1 (!%p392_p12), %2021, %v474_v36  }
  0x29   : > { %713 = vmatprep.subr.bf16.mxu0 (!%p392_p12), %v2022_v18  ;;  %v2027_v21 = vld [vmem:[%s400_s25 + $0x8] ss:$16 sps:$4 sm:$0xff] (!%p392_p12)   ;;  %826 = vmatprep.subr.bf16.mxu1 (!%p392_p12), %v2024_v19  ;;  %v2028_v22 = vld [vmem:[%s400_s25 + $0x24] ss:$16 sps:$4 sm:$0xff] (!%p392_p12)   ;;  %v2030_v23 = vld [vmem:[%s400_s25 + $0x2c] ss:$16 sps:$4 sm:$0xff] (!%p392_p12)  }
  0x2a   : > { %714 = vmatpush1.bf16.msra.mxu0 (!%p392_p12), %v2026_v20  ;;  %827 = vmatpush1.bf16.msra.mxu1 (!%p392_p12), %v2027_v21  ;;  %v2032_v24 = vld [vmem:[%s400_s25 + $0x20] ss:$16 sps:$4 sm:$0xff] (!%p392_p12)   ;;  %v2033_v25 = vld [vmem:[%s400_s25 + $0x28] ss:$16 sps:$4 sm:$0xff] (!%p392_p12)   ;;  %v2034_v26 = vld [vmem:[%s400_s25 + $0x44] ss:$16 sps:$4 sm:$0xff] (!%p392_p12)  }
  0x2b   : > { %715 = vmatprep.subr.bf16.mxu0 (!%p392_p12), %v2028_v22  ;;  %828 = vmatprep.subr.bf16.mxu1 (!%p392_p12), %v2030_v23  ;;  %v2036_v27 = vld [vmem:[%s400_s25 + $0x4c] ss:$16 sps:$4 sm:$0xff] (!%p392_p12)   ;;  %v2038_v28 = vld [vmem:[%s400_s25 + $0x40] ss:$16 sps:$4 sm:$0xff] (!%p392_p12)   ;;  %v2039_v29 = vld [vmem:[%s400_s25 + $0x48] ss:$16 sps:$4 sm:$0xff] (!%p392_p12)  }
  0x2c   : > { %v2040_v30 = vld [vmem:[%s400_s25 + $0x64] ss:$16 sps:$4 sm:$0xff] (!%p392_p12)   ;;  %v2042_v31 = vld [vmem:[%s400_s25 + $0x6c] ss:$16 sps:$4 sm:$0xff] (!%p392_p12)   ;;  %v2044_v33 = vld [vmem:[%s400_s25 + $0x60] ss:$16 sps:$4 sm:$0xff] (!%p392_p12)   ;;  %495 = vperm.xlu0 (!%p392_p12), %2020, %v473_v37   ;;  %505 = vperm.xlu1 (!%p392_p12), %2021, %v475_v38  }
  0x2d   : > { %v2045_v34 = vld [vmem:[%s400_s25 + $0x68] ss:$16 sps:$4 sm:$0xff]   ;;  %v480_v43 = vld [vmem:[%s2528_s2 + $0x40] sm:$0xff]  ;;  %v2048_v46 = vld [vmem:[%s2527_s1 + $0x10] sm:$0xff]   ;;  %s1969_s13 = sshll.u32 %s1894_s10, 6  ;;  %s436_s14 = scalar_lea.vmem [#allocation4], %s1903_s12 }
  0x2e   : > { %716 = vmatpush1.bf16.msra.mxu0 %v2032_v24  ;;  %829 = vmatpush1.bf16.msra.mxu1 %v2033_v25  ;;  %v479_v44 = vld [vmem:[%s2528_s2 + $0x38] sm:$0xff]  ;;  %v481_v45 = vld [vmem:[%s2528_s2 + $0x48] sm:$0xff]  ;;  %v482_v47 = vld [vmem:[%s2528_s2 + $0x50] sm:$0xff]  ;;  %s1830_s15 = sshll.u32 %s436_s14, 4  ;;  %s2482_s23 = scalar_lea.hbm %s2537_s11, %s1969_s13  ;;  %s2484_s15 = int_to_ptr.vmem [resolvable:$true] %s1830_s15 }
  0x2f   : > { %717 = vmatprep.subr.bf16.mxu0 %v2034_v26  ;;  %830 = vmatprep.subr.bf16.mxu1 %v2036_v27  ;;  %v483_v48 = vld [vmem:[%s2528_s2 + $0x58] sm:$0xff]  ;;  %v484_v49 = vld [vmem:[%s2528_s2 + $0x60] sm:$0xff]  ;;  %v485_v50 = vld [vmem:[%s2528_s2 + $0x68] sm:$0xff]  ;;  %s1816_s25 = scalar_lea.sflag [#allocation5], %s2283_s18  ;;  %s2077_s26 = scalar_lea.vmem %s2484_s15, 64 }
  0x30   : > { %510 = vperm.xlu0 %2020, %v476_v39   ;;  %515 = vperm.xlu1 %2021, %v477_v40   ;;  %v2049_v51 = vld [vmem:[%s2527_s1 + $0x18] sm:$0xff]   ;;  %v486_v52 = vld [vmem:[%s2528_s2 + $0x70] sm:$0xff]  ;;  %v1043_v54 = vld [vmem:[%s2530_s4] sm:$0xff]  ;;  %p2078_p13 = scmp.ne.s32.totalorder %s2484_s15, %s2077_s26  ;;  %s2144_s10 = smov [#allocation4]  }
  0x31   : > { %v487_v53 = vld [vmem:[%s2528_s2 + $0x78] sm:$0xff]  ;;  %v1044_v55 = vld [vmem:[%s2530_s4 + $0x8] sm:$0xff]  ;;  %v2050_v56 = vld [vmem:[%s2527_s1 + $0x20] sm:$0xff]   ;;  %s2081_s30 = sshll.u32 %s2144_s10, 4  ;;  %s2082_s30 = int_to_ptr.vmem [resolvable:$false] %s2081_s30 }
  0x32   : > { %718 = vmatpush1.bf16.msra.mxu0 %v2038_v28  ;;  %831 = vmatpush1.bf16.msra.mxu1 %v2039_v29  ;;  %v1045_v57 = vld [vmem:[%s2530_s4 + $0x10] sm:$0xff]  ;;  %v1046_v58 = vld [vmem:[%s2530_s4 + $0x18] sm:$0xff]  ;;  %v1047_v59 = vld [vmem:[%s2530_s4 + $0x20] sm:$0xff]  ;;  %p2079_p0 = pnand %p2078_p13, %p2246_p6  ;;  %s2083_s12 = scalar_lea.vmem %s2082_s30, 128 }
  0x33   : > { %719 = vmatprep.subr.bf16.mxu0 %v2040_v30  ;;  %832 = vmatprep.subr.bf16.mxu1 %v2042_v31  ;;  %v1048_v60 = vld [vmem:[%s2530_s4 + $0x28] sm:$0xff]  ;;  %v1049_v62 = vld [vmem:[%s2530_s4 + $0x30] sm:$0xff]  ;;  %v1050_v63 = vld [vmem:[%s2530_s4 + $0x38] sm:$0xff]  ;;  %p2084_p2 = scmp.lt.s32.totalorder %s2484_s15, %s2082_s30  ;;  %p2085_p3 = scmp.lt.s32.totalorder %s2083_s12, %s2077_s26 }
  0x34   : > { %520 = vperm.xlu0 %2020, %v478_v42   ;;  %525 = vperm.xlu1 %2021, %v479_v44   ;;  %v2051_v61 = vld [vmem:[%s2527_s1 + $0x28] sm:$0xff]   ;;  %v1313_v0 = vld [vmem:[%s2532_s6] sm:$0xff]  ;;  %v2052_v2 = vld [vmem:[%s2527_s1 + $0x30] sm:$0xff]   ;;  %p2080_p1 = pneg %p2079_p0 }
  0x35   : > { %v1314_v1 = vld [vmem:[%s2532_s6 + $0x8] sm:$0xff]  ;;  %v1315_v3 = vld [vmem:[%s2532_s6 + $0x10] sm:$0xff]  ;;  %v1316_v4 = vld [vmem:[%s2532_s6 + $0x18] sm:$0xff]  ;;  %p2086_p4 = por %p2085_p3, %p2084_p2 }
  0x36   : > { %720 = vmatpush1.bf16.msra.mxu0 %v2044_v33  ;;  %833 = vmatpush1.bf16.msra.mxu1 %v2045_v34  ;;  %v1485_v5 = vld [vmem:[%s2534_s8] sm:$0xff]  ;;  %v1486_v6 = vld [vmem:[%s2534_s8 + $0x8] sm:$0xff]  ;;  %v2053_v7 = vld [vmem:[%s2527_s1 + $0x38] sm:$0xff]  }
  0x37   : > { %v1601_v8 = vld [vmem:[#allocation2] sm:$0x1]  ;;  %p2087_p5 = pnand %p2086_p4, %p2080_p1 }
  0x38   : > { %530 = vperm.xlu0 %2020, %v480_v43   ;;  %535 = vperm.xlu1 %2021, %v481_v45  }
  0x39   : > { %1928 = vmatmul.mubr.msk.bf16.vlgmr.msra.gmra.mrb[0].mxu0 %vm688_vm0, %v2046_v35  ;;  %1936 = vmatmul.mubr.msk.bf16.vlgmr.msra.gmra.mrb[0].mxu1 %vm688_vm0, %v2046_v35 }
  0x3a   : > { %755 = vmatprep.mubr.bf16.mxu0 %v2141_v17  ;;  %868 = vmatprep.mubr.bf16.mxu1 %v2141_v17 }
  0x3c   : > { %540 = vperm.xlu0 %2020, %v482_v47   ;;  %545 = vperm.xlu1 %2021, %v483_v48  }
  0x40   : > { %550 = vperm.xlu0 %2020, %v484_v49   ;;  %555 = vperm.xlu1 %2021, %v485_v50  }
  0x41   : > { %1929 = vmatmul.mubr.msk.bf16.gmra.mrb[4].mxu0 %vm688_vm0, %v2047_v41  ;;  %1937 = vmatmul.mubr.msk.bf16.gmra.mrb[4].mxu1 %vm688_vm0, %v2047_v41 }
  0x42   : > { %765 = vmatprep.mubr.bf16.mxu0 %v2141_v17  ;;  %878 = vmatprep.mubr.bf16.mxu1 %v2141_v17 }
  0x44   : > { %560 = vperm.xlu0 %2020, %v486_v52   ;;  %565 = vperm.xlu1 %2021, %v487_v53  }
  0x48   : > { %1053 = vperm.xlu0 %2020, %v1043_v54   ;;  %1058 = vperm.xlu1 %2021, %v1044_v55  }
  0x49   : > { %1930 = vmatmul.mubr.msk.bf16.gmra.mrb[8].mxu0 %vm688_vm0, %v2048_v46  ;;  %1938 = vmatmul.mubr.msk.bf16.gmra.mrb[8].mxu1 %vm688_vm0, %v2048_v46 }
  0x4a   : > { %775 = vmatprep.mubr.bf16.mxu0 %v2141_v17  ;;  %888 = vmatprep.mubr.bf16.mxu1 %v2141_v17 }
  0x4c   : > { %1063 = vperm.xlu0 %2020, %v1045_v57   ;;  %1068 = vperm.xlu1 %2021, %v1046_v58  }
  0x50   : > { %1073 = vperm.xlu0 %2020, %v1047_v59   ;;  %1078 = vperm.xlu1 %2021, %v1048_v60  }
  0x51   : > { %1931 = vmatmul.mubr.msk.bf16.gmra.mrb[12].mxu0 %vm688_vm0, %v2049_v51  ;;  %1939 = vmatmul.mubr.msk.bf16.gmra.mrb[12].mxu1 %vm688_vm0, %v2049_v51 }
  0x52   : > { %785 = vmatprep.mubr.bf16.mxu0 %v2141_v17  ;;  %898 = vmatprep.mubr.bf16.mxu1 %v2141_v17 }
  0x54   : > { %1083 = vperm.xlu0 %2020, %v1049_v62   ;;  %1088 = vperm.xlu1 %2021, %v1050_v63  }
  0x58   : > { %1319 = vperm.xlu0 %2020, %v1313_v0   ;;  %1324 = vperm.xlu1 %2021, %v1314_v1  }
  0x59   : > { %1932 = vmatmul.mubr.msk.bf16.gmra.mrb[16].mxu0 %vm688_vm0, %v2050_v56  ;;  %1940 = vmatmul.mubr.msk.bf16.gmra.mrb[16].mxu1 %vm688_vm0, %v2050_v56 }
  0x5a   : > { %795 = vmatprep.mubr.bf16.mxu0 %v2141_v17  ;;  %908 = vmatprep.mubr.bf16.mxu1 %v2141_v17 }
  0x5c   : > { %1329 = vperm.xlu0 %2020, %v1315_v3   ;;  %1334 = vperm.xlu1 %2021, %v1316_v4  }
  0x60   : > { %1489 = vperm.xlu0 %2020, %v1485_v5   ;;  %1494 = vperm.xlu1 %2021, %v1486_v6  }
  0x61   : > { %1933 = vmatmul.mubr.msk.bf16.gmra.mrb[20].mxu0 %vm688_vm0, %v2051_v61  ;;  %1941 = vmatmul.mubr.msk.bf16.gmra.mrb[20].mxu1 %vm688_vm0, %v2051_v61 }
  0x62   : > { %805 = vmatprep.mubr.bf16.mxu0 %v2141_v17  ;;  %918 = vmatprep.mubr.bf16.mxu1 %v2141_v17 }
  0x64   : > { %1604 = vperm.xlu0 %2020, %v1601_v8  }
  0x69   : > { %1934 = vmatmul.mubr.msk.bf16.gmra.mrb[24].mxu0 %vm688_vm0, %v2052_v2  ;;  %1942 = vmatmul.mubr.msk.bf16.gmra.mrb[24].mxu1 %vm688_vm0, %v2052_v2 }
  0x6a   : > { %815 = vmatprep.mubr.bf16.mxu0 %v2141_v17  ;;  %928 = vmatprep.mubr.bf16.mxu1 %v2141_v17 }
  0x71   : > { %1935 = vmatmul.mubr.msk.bf16.gmra.mrb[28].mxu0 %vm688_vm0, %v2053_v7  ;;  %1943 = vmatmul.mubr.msk.bf16.gmra.mrb[28].mxu1 %vm688_vm0, %v2053_v7 }
  0x72   : > { %1147 = vmatprep.mubr.bf16.mxu0 %v2141_v17  ;;  %1220 = vmatprep.mubr.bf16.mxu1 %v2141_v17 }
  0xa7   : > { %v491_v9 = vpop.permute.xlu0 %490  ;;  %v501_v11 = vpop.permute.xlu1 %500 }
  0xab   : > { %v496_v10 = vpop.permute.xlu0 %495  ;;  %v506_v37 = vpop.permute.xlu1 %505 }
  0xaf   : > { %v511_v2 = vpop.permute.xlu0 %510  ;;  %v516_v3 = vpop.permute.xlu1 %515 }
 0x10c   : > { %v747_v12 = vpop.f32.mrb[0].mxu0  ;;  %v860_v13 = vpop.f32.mrb[0].mxu1 }
 0x10d   : > { %v748_v14 = vadd.f32 %v747_v12, %v491_v9  ;;  %v861_v15 = vadd.f32 %v860_v13, %v491_v9  ;;  %v749_v16 = vpop.f32.mrb[1].mxu0  ;;  %v862_v18 = vpop.f32.mrb[1].mxu1 }
 0x10e   : > { %v750_v19 = vadd.f32 %v749_v16, %v491_v9  ;;  %v863_v20 = vadd.f32 %v862_v18, %v491_v9  ;;  %v751_v21 = vpop.f32.mrb[2].mxu0  ;;  %v864_v22 = vpop.f32.mrb[2].mxu1 }
 0x10f   : > { %v752_v23 = vadd.f32 %v751_v21, %v496_v10  ;;  %v865_v24 = vadd.f32 %v864_v22, %v496_v10  ;;  %v753_v25 = vpop.f32.mrb[3].mxu0  ;;  %v866_v26 = vpop.f32.mrb[3].mxu1  ;;  %v939_v29 = vmax.f32 %v748_v14, 0.0  ;;  %v941_v30 = vmax.f32 %v861_v15, 0.0 }
 0x110   : > { %v754_v27 = vadd.f32 %v753_v25, %v496_v10  ;;  %v867_v28 = vadd.f32 %v866_v26, %v496_v10  ;;  %v940_v33 = vmax.f32 %v750_v19, 0.0  ;;  %v942_v34 = vmax.f32 %v863_v20, 0.0 }
 0x111   : > { %v943_v31 = vmax.f32 %v752_v23, 0.0  ;;  %v945_v32 = vmax.f32 %v865_v24, 0.0 }
 0x112   : > { %v944_v35 = vmax.f32 %v754_v27, 0.0  ;;  %v946_v36 = vmax.f32 %v867_v28, 0.0 }
 0x113   : > { %v1011_v38 = vpack.c.bf16 %v943_v31, %v939_v29  ;;  %v1013_v39 = vpack.c.bf16 %v945_v32, %v941_v30 }
 0x114   : > { %v1012_v40 = vpack.c.bf16 %v944_v35, %v940_v33  ;;  %v1014_v41 = vpack.c.bf16 %v946_v36, %v942_v34  ;;  %v757_v42 = vpop.f32.mrb[4].mxu0  ;;  %v870_v43 = vpop.f32.mrb[4].mxu1 }
 0x115   : > { %v758_v44 = vadd.f32 %v757_v42, %v501_v11  ;;  %v871_v45 = vadd.f32 %v870_v43, %v501_v11  ;;  %v759_v46 = vpop.f32.mrb[5].mxu0  ;;  %v872_v47 = vpop.f32.mrb[5].mxu1 }
 0x116   : > { %v760_v48 = vadd.f32 %v759_v46, %v501_v11  ;;  %v873_v49 = vadd.f32 %v872_v47, %v501_v11  ;;  %v761_v50 = vpop.f32.mrb[6].mxu0  ;;  %v874_v51 = vpop.f32.mrb[6].mxu1  ;;  %1115 = vmatprep.subr.bf16.mxu0 %v1012_v40  ;;  %1188 = vmatprep.subr.bf16.mxu1 %v1014_v41 }
 0x117   : > { %v762_v52 = vadd.f32 %v761_v50, %v506_v37  ;;  %v875_v53 = vadd.f32 %v874_v51, %v506_v37  ;;  %v763_v54 = vpop.f32.mrb[7].mxu0  ;;  %v876_v55 = vpop.f32.mrb[7].mxu1  ;;  %1116 = vmatpush1.bf16.msra.mxu0 %v1011_v38  ;;  %1189 = vmatpush1.bf16.msra.mxu1 %v1013_v39  ;;  %v947_v58 = vmax.f32 %v758_v44, 0.0  ;;  %v949_v59 = vmax.f32 %v871_v45, 0.0 }
 0x118   : > { %v764_v56 = vadd.f32 %v763_v54, %v506_v37  ;;  %v877_v57 = vadd.f32 %v876_v55, %v506_v37  ;;  %v948_v62 = vmax.f32 %v760_v48, 0.0  ;;  %v950_v63 = vmax.f32 %v873_v49, 0.0  ;;  %v521_v33 = vpop.permute.xlu0 %520  ;;  %v526_v34 = vpop.permute.xlu1 %525 }
 0x119   : > { %v951_v60 = vmax.f32 %v762_v52, 0.0  ;;  %v953_v61 = vmax.f32 %v875_v53, 0.0 }
 0x11a   : > { %v952_v0 = vmax.f32 %v764_v56, 0.0  ;;  %v954_v1 = vmax.f32 %v877_v57, 0.0 }
 0x11b   : > { %v1015_v4 = vpack.c.bf16 %v951_v60, %v947_v58  ;;  %v1017_v5 = vpack.c.bf16 %v953_v61, %v949_v59 }
 0x11c   : > { %v1016_v6 = vpack.c.bf16 %v952_v0, %v948_v62  ;;  %v1018_v7 = vpack.c.bf16 %v954_v1, %v950_v63  ;;  %v767_v8 = vpop.f32.mrb[8].mxu0  ;;  %v880_v9 = vpop.f32.mrb[8].mxu1 }
 0x11d   : > { %v768_v10 = vadd.f32 %v767_v8, %v511_v2  ;;  %v881_v11 = vadd.f32 %v880_v9, %v511_v2  ;;  %v769_v12 = vpop.f32.mrb[9].mxu0  ;;  %v882_v13 = vpop.f32.mrb[9].mxu1 }
 0x11e   : > { %v770_v14 = vadd.f32 %v769_v12, %v511_v2  ;;  %v883_v15 = vadd.f32 %v882_v13, %v511_v2  ;;  %v771_v16 = vpop.f32.mrb[10].mxu0  ;;  %v884_v18 = vpop.f32.mrb[10].mxu1  ;;  %1117 = vmatprep.subr.bf16.mxu0 %v1016_v6  ;;  %1190 = vmatprep.subr.bf16.mxu1 %v1018_v7 }
 0x11f   : > { %v772_v19 = vadd.f32 %v771_v16, %v516_v3  ;;  %v885_v20 = vadd.f32 %v884_v18, %v516_v3  ;;  %v773_v21 = vpop.f32.mrb[11].mxu0  ;;  %v886_v22 = vpop.f32.mrb[11].mxu1  ;;  %1118 = vmatpush1.bf16.msra.mxu0 %v1015_v4  ;;  %1191 = vmatpush1.bf16.msra.mxu1 %v1017_v5  ;;  %v955_v25 = vmax.f32 %v768_v10, 0.0  ;;  %v957_v26 = vmax.f32 %v881_v11, 0.0 }
 0x120   : > { %v774_v23 = vadd.f32 %v773_v21, %v516_v3  ;;  %v887_v24 = vadd.f32 %v886_v22, %v516_v3  ;;  %v956_v29 = vmax.f32 %v770_v14, 0.0  ;;  %v958_v30 = vmax.f32 %v883_v15, 0.0  ;;  %v531_v63 = vpop.permute.xlu0 %530  ;;  %v536_v0 = vpop.permute.xlu1 %535 }
 0x121   : > { %v959_v27 = vmax.f32 %v772_v19, 0.0  ;;  %v961_v28 = vmax.f32 %v885_v20, 0.0 }
 0x122   : > { %v960_v31 = vmax.f32 %v774_v23, 0.0  ;;  %v962_v32 = vmax.f32 %v887_v24, 0.0 }
 0x123   : > { %v1019_v35 = vpack.c.bf16 %v959_v27, %v955_v25  ;;  %v1021_v36 = vpack.c.bf16 %v961_v28, %v957_v26 }
 0x124   : > { %v1020_v37 = vpack.c.bf16 %v960_v31, %v956_v29  ;;  %v1022_v38 = vpack.c.bf16 %v962_v32, %v958_v30  ;;  %v777_v39 = vpop.f32.mrb[12].mxu0  ;;  %v890_v40 = vpop.f32.mrb[12].mxu1 }
 0x125   : > { %v778_v41 = vadd.f32 %v777_v39, %v521_v33  ;;  %v891_v42 = vadd.f32 %v890_v40, %v521_v33  ;;  %v779_v43 = vpop.f32.mrb[13].mxu0  ;;  %v892_v44 = vpop.f32.mrb[13].mxu1 }
 0x126   : > { %v780_v45 = vadd.f32 %v779_v43, %v521_v33  ;;  %v893_v46 = vadd.f32 %v892_v44, %v521_v33  ;;  %v781_v47 = vpop.f32.mrb[14].mxu0  ;;  %v894_v48 = vpop.f32.mrb[14].mxu1  ;;  %1119 = vmatprep.subr.bf16.mxu0 %v1020_v37  ;;  %1192 = vmatprep.subr.bf16.mxu1 %v1022_v38 }
 0x127   : > { %v782_v49 = vadd.f32 %v781_v47, %v526_v34  ;;  %v895_v50 = vadd.f32 %v894_v48, %v526_v34  ;;  %v783_v51 = vpop.f32.mrb[15].mxu0  ;;  %v896_v52 = vpop.f32.mrb[15].mxu1  ;;  %1120 = vmatpush1.bf16.msra.mxu0 %v1019_v35  ;;  %1193 = vmatpush1.bf16.msra.mxu1 %v1021_v36  ;;  %v963_v55 = vmax.f32 %v778_v41, 0.0  ;;  %v965_v56 = vmax.f32 %v891_v42, 0.0 }
 0x128   : > { %v784_v53 = vadd.f32 %v783_v51, %v526_v34  ;;  %v897_v54 = vadd.f32 %v896_v52, %v526_v34  ;;  %v964_v59 = vmax.f32 %v780_v45, 0.0  ;;  %v966_v60 = vmax.f32 %v893_v46, 0.0  ;;  %v541_v30 = vpop.permute.xlu0 %540  ;;  %v546_v31 = vpop.permute.xlu1 %545 }
 0x129   : > { %v967_v57 = vmax.f32 %v782_v49, 0.0  ;;  %v969_v58 = vmax.f32 %v895_v50, 0.0 }
 0x12a   : > { %v968_v61 = vmax.f32 %v784_v53, 0.0  ;;  %v970_v62 = vmax.f32 %v897_v54, 0.0 }
 0x12b   : > { %v1023_v1 = vpack.c.bf16 %v967_v57, %v963_v55  ;;  %v1025_v2 = vpack.c.bf16 %v969_v58, %v965_v56 }
 0x12c   : > { %v1024_v3 = vpack.c.bf16 %v968_v61, %v964_v59  ;;  %v1026_v4 = vpack.c.bf16 %v970_v62, %v966_v60  ;;  %v787_v5 = vpop.f32.mrb[16].mxu0  ;;  %v900_v6 = vpop.f32.mrb[16].mxu1 }
 0x12d   : > { %v788_v7 = vadd.f32 %v787_v5, %v531_v63  ;;  %v901_v8 = vadd.f32 %v900_v6, %v531_v63  ;;  %v789_v9 = vpop.f32.mrb[17].mxu0  ;;  %v902_v10 = vpop.f32.mrb[17].mxu1 }
 0x12e   : > { %v790_v11 = vadd.f32 %v789_v9, %v531_v63  ;;  %v903_v12 = vadd.f32 %v902_v10, %v531_v63  ;;  %v791_v13 = vpop.f32.mrb[18].mxu0  ;;  %v904_v14 = vpop.f32.mrb[18].mxu1  ;;  %1121 = vmatprep.subr.bf16.mxu0 %v1024_v3  ;;  %1194 = vmatprep.subr.bf16.mxu1 %v1026_v4 }
 0x12f   : > { %v792_v15 = vadd.f32 %v791_v13, %v536_v0  ;;  %v905_v16 = vadd.f32 %v904_v14, %v536_v0  ;;  %v793_v18 = vpop.f32.mrb[19].mxu0  ;;  %v906_v19 = vpop.f32.mrb[19].mxu1  ;;  %1122 = vmatpush1.bf16.msra.mxu0 %v1023_v1  ;;  %1195 = vmatpush1.bf16.msra.mxu1 %v1025_v2  ;;  %v971_v22 = vmax.f32 %v788_v7, 0.0  ;;  %v973_v23 = vmax.f32 %v901_v8, 0.0 }
 0x130   : > { %v794_v20 = vadd.f32 %v793_v18, %v536_v0  ;;  %v907_v21 = vadd.f32 %v906_v19, %v536_v0  ;;  %v972_v26 = vmax.f32 %v790_v11, 0.0  ;;  %v974_v27 = vmax.f32 %v903_v12, 0.0  ;;  %v551_v60 = vpop.permute.xlu0 %550  ;;  %v556_v61 = vpop.permute.xlu1 %555 }
 0x131   : > { %v975_v24 = vmax.f32 %v792_v15, 0.0  ;;  %v977_v25 = vmax.f32 %v905_v16, 0.0 }
 0x132   : > { %v976_v28 = vmax.f32 %v794_v20, 0.0  ;;  %v978_v29 = vmax.f32 %v907_v21, 0.0 }
 0x133   : > { %v1027_v32 = vpack.c.bf16 %v975_v24, %v971_v22  ;;  %v1029_v33 = vpack.c.bf16 %v977_v25, %v973_v23 }
 0x134   : > { %v1028_v34 = vpack.c.bf16 %v976_v28, %v972_v26  ;;  %v1030_v35 = vpack.c.bf16 %v978_v29, %v974_v27  ;;  %v797_v36 = vpop.f32.mrb[20].mxu0  ;;  %v910_v37 = vpop.f32.mrb[20].mxu1 }
 0x135   : > { %v798_v38 = vadd.f32 %v797_v36, %v541_v30  ;;  %v911_v39 = vadd.f32 %v910_v37, %v541_v30  ;;  %v799_v40 = vpop.f32.mrb[21].mxu0  ;;  %v912_v41 = vpop.f32.mrb[21].mxu1 }
 0x136   : > { %v800_v42 = vadd.f32 %v799_v40, %v541_v30  ;;  %v913_v43 = vadd.f32 %v912_v41, %v541_v30  ;;  %v801_v44 = vpop.f32.mrb[22].mxu0  ;;  %v914_v45 = vpop.f32.mrb[22].mxu1  ;;  %1123 = vmatprep.subr.bf16.mxu0 %v1028_v34  ;;  %1196 = vmatprep.subr.bf16.mxu1 %v1030_v35 }
 0x137   : > { %v802_v46 = vadd.f32 %v801_v44, %v546_v31  ;;  %v915_v47 = vadd.f32 %v914_v45, %v546_v31  ;;  %v803_v48 = vpop.f32.mrb[23].mxu0  ;;  %v916_v49 = vpop.f32.mrb[23].mxu1  ;;  %1124 = vmatpush1.bf16.msra.mxu0 %v1027_v32  ;;  %1197 = vmatpush1.bf16.msra.mxu1 %v1029_v33  ;;  %v979_v52 = vmax.f32 %v798_v38, 0.0  ;;  %v981_v53 = vmax.f32 %v911_v39, 0.0 }
 0x138   : > { %v804_v50 = vadd.f32 %v803_v48, %v546_v31  ;;  %v917_v51 = vadd.f32 %v916_v49, %v546_v31  ;;  %v980_v56 = vmax.f32 %v800_v42, 0.0  ;;  %v982_v57 = vmax.f32 %v913_v43, 0.0  ;;  %v561_v27 = vpop.permute.xlu0 %560  ;;  %v566_v28 = vpop.permute.xlu1 %565 }
 0x139   : > { %v983_v54 = vmax.f32 %v802_v46, 0.0  ;;  %v985_v55 = vmax.f32 %v915_v47, 0.0 }
 0x13a   : > { %v984_v58 = vmax.f32 %v804_v50, 0.0  ;;  %v986_v59 = vmax.f32 %v917_v51, 0.0 }
 0x13b   : > { %v1031_v62 = vpack.c.bf16 %v983_v54, %v979_v52  ;;  %v1033_v63 = vpack.c.bf16 %v985_v55, %v981_v53 }
 0x13c   : > { %v1032_v0 = vpack.c.bf16 %v984_v58, %v980_v56  ;;  %v1034_v1 = vpack.c.bf16 %v986_v59, %v982_v57  ;;  %v807_v2 = vpop.f32.mrb[24].mxu0  ;;  %v920_v3 = vpop.f32.mrb[24].mxu1 }
 0x13d   : > { %v808_v4 = vadd.f32 %v807_v2, %v551_v60  ;;  %v921_v5 = vadd.f32 %v920_v3, %v551_v60  ;;  %v809_v6 = vpop.f32.mrb[25].mxu0  ;;  %v922_v7 = vpop.f32.mrb[25].mxu1 }
 0x13e   : > { %v810_v8 = vadd.f32 %v809_v6, %v551_v60  ;;  %v923_v9 = vadd.f32 %v922_v7, %v551_v60  ;;  %v811_v10 = vpop.f32.mrb[26].mxu0  ;;  %v924_v11 = vpop.f32.mrb[26].mxu1  ;;  %1125 = vmatprep.subr.bf16.mxu0 %v1032_v0  ;;  %1198 = vmatprep.subr.bf16.mxu1 %v1034_v1  ;;  %v2057_v0 = vld [vmem:[%s2529_s3 + $0x18] sm:$0xff]  }
 0x13f   : > { %v812_v12 = vadd.f32 %v811_v10, %v556_v61  ;;  %v925_v13 = vadd.f32 %v924_v11, %v556_v61  ;;  %v813_v14 = vpop.f32.mrb[27].mxu0  ;;  %v926_v15 = vpop.f32.mrb[27].mxu1  ;;  %1126 = vmatpush1.bf16.msra.mxu0 %v1031_v62  ;;  %1199 = vmatpush1.bf16.msra.mxu1 %v1033_v63  ;;  %v987_v19 = vmax.f32 %v808_v4, 0.0  ;;  %v989_v20 = vmax.f32 %v921_v5, 0.0  ;;  %v2055_v62 = vld [vmem:[%s2529_s3 + $0x8] sm:$0xff]   ;;  %v2056_v63 = vld [vmem:[%s2529_s3 + $0x10] sm:$0xff]  }
 0x140   : > { %v814_v16 = vadd.f32 %v813_v14, %v556_v61  ;;  %v927_v18 = vadd.f32 %v926_v15, %v556_v61  ;;  %v988_v23 = vmax.f32 %v810_v8, 0.0  ;;  %v990_v24 = vmax.f32 %v923_v9, 0.0  ;;  %v2054_v61 = vld [vmem:[%s2529_s3] sm:$0xff]   ;;  %v1054_v1 = vpop.permute.xlu0 %1053  ;;  %v1059_v2 = vpop.permute.xlu1 %1058 }
 0x141   : > { %v991_v21 = vmax.f32 %v812_v12, 0.0  ;;  %v993_v22 = vmax.f32 %v925_v13, 0.0 }
 0x142   : > { %v992_v25 = vmax.f32 %v814_v16, 0.0  ;;  %v994_v26 = vmax.f32 %v927_v18, 0.0 }
 0x143   : > { %v1035_v29 = vpack.c.bf16 %v991_v21, %v987_v19  ;;  %v1037_v30 = vpack.c.bf16 %v993_v22, %v989_v20 }
 0x144   : > { %v1036_v31 = vpack.c.bf16 %v992_v25, %v988_v23  ;;  %v1038_v32 = vpack.c.bf16 %v994_v26, %v990_v24  ;;  %v817_v33 = vpop.f32.mrb[28].mxu0  ;;  %v930_v34 = vpop.f32.mrb[28].mxu1 }
 0x145   : > { %v818_v35 = vadd.f32 %v817_v33, %v561_v27  ;;  %v931_v36 = vadd.f32 %v930_v34, %v561_v27  ;;  %v819_v37 = vpop.f32.mrb[29].mxu0  ;;  %v932_v38 = vpop.f32.mrb[29].mxu1 }
 0x146   : > { %v820_v39 = vadd.f32 %v819_v37, %v561_v27  ;;  %v933_v40 = vadd.f32 %v932_v38, %v561_v27  ;;  %v821_v41 = vpop.f32.mrb[30].mxu0  ;;  %v934_v42 = vpop.f32.mrb[30].mxu1  ;;  %1127 = vmatprep.subr.bf16.mxu0 %v1036_v31  ;;  %1200 = vmatprep.subr.bf16.mxu1 %v1038_v32 }
 0x147   : > { %v822_v43 = vadd.f32 %v821_v41, %v566_v28  ;;  %v935_v44 = vadd.f32 %v934_v42, %v566_v28  ;;  %v823_v45 = vpop.f32.mrb[31].mxu0  ;;  %v936_v46 = vpop.f32.mrb[31].mxu1  ;;  %1128 = vmatpush1.bf16.msra.mxu0 %v1035_v29  ;;  %1201 = vmatpush1.bf16.msra.mxu1 %v1037_v30  ;;  %v995_v49 = vmax.f32 %v818_v35, 0.0  ;;  %v997_v50 = vmax.f32 %v931_v36, 0.0 }
 0x148   : > { %v824_v47 = vadd.f32 %v823_v45, %v566_v28  ;;  %v937_v48 = vadd.f32 %v936_v46, %v566_v28  ;;  %v996_v53 = vmax.f32 %v820_v39, 0.0  ;;  %v998_v54 = vmax.f32 %v933_v40, 0.0  ;;  %v1064_v28 = vpop.permute.xlu0 %1063  ;;  %v1069_v29 = vpop.permute.xlu1 %1068 }
 0x149   : > { %v999_v51 = vmax.f32 %v822_v43, 0.0  ;;  %v1001_v52 = vmax.f32 %v935_v44, 0.0 }
 0x14a   : > { %v1000_v55 = vmax.f32 %v824_v47, 0.0  ;;  %v1002_v56 = vmax.f32 %v937_v48, 0.0 }
 0x14b   : > { %v1039_v57 = vpack.c.bf16 %v999_v51, %v995_v49  ;;  %v1041_v58 = vpack.c.bf16 %v1001_v52, %v997_v50 }
 0x14c   : > { %v1040_v59 = vpack.c.bf16 %v1000_v55, %v996_v53  ;;  %v1042_v60 = vpack.c.bf16 %v1002_v56, %v998_v54 }
 0x14e   : > { %1129 = vmatprep.subr.bf16.mxu0 %v1040_v59  ;;  %1202 = vmatprep.subr.bf16.mxu1 %v1042_v60  ;;  %v1079_v59 = vpop.permute.xlu1 %1078 }
 0x14f   : > { %1130 = vmatpush1.bf16.msra.mxu0 %v1039_v57  ;;  %1203 = vmatpush1.bf16.msra.mxu1 %v1041_v58  ;;  %v1074_v58 = vpop.permute.xlu0 %1073 }
 0x152   : > { %1148 = vmatmul.mubr.bf16.vlgmr.msra.gmra.mrb[32].mxu0 %v2054_v61  ;;  %1221 = vmatmul.mubr.bf16.vlgmr.msra.gmra.mrb[32].mxu1 %v2054_v61 }
 0x153   : > { %1157 = vmatprep.mubr.bf16.mxu0 %v2141_v17  ;;  %1230 = vmatprep.mubr.bf16.mxu1 %v2141_v17 }
 0x15a   : > { %1158 = vmatmul.mubr.bf16.gmra.mrb[36].mxu0 %v2055_v62  ;;  %1231 = vmatmul.mubr.bf16.gmra.mrb[36].mxu1 %v2055_v62 }
 0x15b   : > { %1167 = vmatprep.mubr.bf16.mxu0 %v2141_v17  ;;  %1240 = vmatprep.mubr.bf16.mxu1 %v2141_v17 }
 0x162   : > { %1168 = vmatmul.mubr.bf16.gmra.mrb[40].mxu0 %v2056_v63  ;;  %1241 = vmatmul.mubr.bf16.gmra.mrb[40].mxu1 %v2056_v63 }
 0x163   : > { %1177 = vmatprep.mubr.bf16.mxu0 %v2141_v17  ;;  %1250 = vmatprep.mubr.bf16.mxu1 %v2141_v17 }
 0x16a   : > { %1178 = vmatmul.mubr.bf16.gmra.mrb[44].mxu0 %v2057_v0  ;;  %1251 = vmatmul.mubr.bf16.gmra.mrb[44].mxu1 %v2057_v0 }
 0x16b   : > { %1385 = vmatprep.mubr.bf16.mxu0 %v2141_v17  ;;  %1438 = vmatprep.mubr.bf16.mxu1 %v2141_v17 }
 0x225   : > { %v1149_v3 = vpop.f32.mrb[32].mxu0  ;;  %v1222_v4 = vpop.f32.mrb[32].mxu1 }
 0x226   : > { %v1150_v5 = vadd.f32 %v1149_v3, %v1054_v1  ;;  %v1223_v6 = vadd.f32 %v1222_v4, %v1054_v1  ;;  %v1151_v7 = vpop.f32.mrb[33].mxu0  ;;  %v1224_v8 = vpop.f32.mrb[33].mxu1 }
 0x227   : > { %v1152_v9 = vadd.f32 %v1151_v7, %v1054_v1  ;;  %v1225_v10 = vadd.f32 %v1224_v8, %v1054_v1  ;;  %v1153_v11 = vpop.f32.mrb[34].mxu0  ;;  %v1226_v12 = vpop.f32.mrb[34].mxu1 }
 0x228   : > { %v1154_v13 = vadd.f32 %v1153_v11, %v1059_v2  ;;  %v1227_v14 = vadd.f32 %v1226_v12, %v1059_v2  ;;  %v1155_v15 = vpop.f32.mrb[35].mxu0  ;;  %v1228_v16 = vpop.f32.mrb[35].mxu1  ;;  %v1261_v20 = vmax.f32 %v1150_v5, 0.0  ;;  %v1263_v21 = vmax.f32 %v1223_v6, 0.0 }
 0x229   : > { %v1156_v18 = vadd.f32 %v1155_v15, %v1059_v2  ;;  %v1229_v19 = vadd.f32 %v1228_v16, %v1059_v2  ;;  %v1262_v24 = vmax.f32 %v1152_v9, 0.0  ;;  %v1264_v25 = vmax.f32 %v1225_v10, 0.0 }
 0x22a   : > { %v1265_v22 = vmax.f32 %v1154_v13, 0.0  ;;  %v1267_v23 = vmax.f32 %v1227_v14, 0.0 }
 0x22b   : > { %v1266_v26 = vmax.f32 %v1156_v18, 0.0  ;;  %v1268_v27 = vmax.f32 %v1229_v19, 0.0 }
 0x22c   : > { %v1297_v30 = vpack.c.bf16 %v1265_v22, %v1261_v20  ;;  %v1299_v31 = vpack.c.bf16 %v1267_v23, %v1263_v21 }
 0x22d   : > { %v1298_v32 = vpack.c.bf16 %v1266_v26, %v1262_v24  ;;  %v1300_v33 = vpack.c.bf16 %v1268_v27, %v1264_v25  ;;  %v1159_v34 = vpop.f32.mrb[36].mxu0  ;;  %v1232_v35 = vpop.f32.mrb[36].mxu1 }
 0x22e   : > { %v1160_v36 = vadd.f32 %v1159_v34, %v1064_v28  ;;  %v1233_v37 = vadd.f32 %v1232_v35, %v1064_v28  ;;  %v1161_v38 = vpop.f32.mrb[37].mxu0  ;;  %v1234_v39 = vpop.f32.mrb[37].mxu1 }
 0x22f   : > { %v1162_v40 = vadd.f32 %v1161_v38, %v1064_v28  ;;  %v1235_v41 = vadd.f32 %v1234_v39, %v1064_v28  ;;  %v1163_v42 = vpop.f32.mrb[38].mxu0  ;;  %v1236_v43 = vpop.f32.mrb[38].mxu1  ;;  %1353 = vmatprep.subr.bf16.mxu0 %v1298_v32  ;;  %1406 = vmatprep.subr.bf16.mxu1 %v1300_v33 }
 0x230   : > { %v1164_v44 = vadd.f32 %v1163_v42, %v1069_v29  ;;  %v1237_v45 = vadd.f32 %v1236_v43, %v1069_v29  ;;  %v1165_v46 = vpop.f32.mrb[39].mxu0  ;;  %v1238_v47 = vpop.f32.mrb[39].mxu1  ;;  %1354 = vmatpush1.bf16.msra.mxu0 %v1297_v30  ;;  %1407 = vmatpush1.bf16.msra.mxu1 %v1299_v31  ;;  %v1269_v50 = vmax.f32 %v1160_v36, 0.0  ;;  %v1271_v51 = vmax.f32 %v1233_v37, 0.0 }
 0x231   : > { %v1166_v48 = vadd.f32 %v1165_v46, %v1069_v29  ;;  %v1239_v49 = vadd.f32 %v1238_v47, %v1069_v29  ;;  %v1270_v54 = vmax.f32 %v1162_v40, 0.0  ;;  %v1272_v55 = vmax.f32 %v1235_v41, 0.0  ;;  %v1084_v25 = vpop.permute.xlu0 %1083  ;;  %v1089_v26 = vpop.permute.xlu1 %1088 }
 0x232   : > { %v1273_v52 = vmax.f32 %v1164_v44, 0.0  ;;  %v1275_v53 = vmax.f32 %v1237_v45, 0.0 }
 0x233   : > { %v1274_v56 = vmax.f32 %v1166_v48, 0.0  ;;  %v1276_v57 = vmax.f32 %v1239_v49, 0.0 }
 0x234   : > { %v1301_v60 = vpack.c.bf16 %v1273_v52, %v1269_v50  ;;  %v1303_v61 = vpack.c.bf16 %v1275_v53, %v1271_v51 }
 0x235   : > { %v1302_v62 = vpack.c.bf16 %v1274_v56, %v1270_v54  ;;  %v1304_v63 = vpack.c.bf16 %v1276_v57, %v1272_v55  ;;  %v1169_v0 = vpop.f32.mrb[40].mxu0  ;;  %v1242_v1 = vpop.f32.mrb[40].mxu1 }
 0x236   : > { %v1170_v2 = vadd.f32 %v1169_v0, %v1074_v58  ;;  %v1243_v3 = vadd.f32 %v1242_v1, %v1074_v58  ;;  %v1171_v4 = vpop.f32.mrb[41].mxu0  ;;  %v1244_v5 = vpop.f32.mrb[41].mxu1 }
 0x237   : > { %v1172_v6 = vadd.f32 %v1171_v4, %v1074_v58  ;;  %v1245_v7 = vadd.f32 %v1244_v5, %v1074_v58  ;;  %v1173_v8 = vpop.f32.mrb[42].mxu0  ;;  %v1246_v9 = vpop.f32.mrb[42].mxu1  ;;  %1355 = vmatprep.subr.bf16.mxu0 %v1302_v62  ;;  %1408 = vmatprep.subr.bf16.mxu1 %v1304_v63 }
 0x238   : > { %v1174_v10 = vadd.f32 %v1173_v8, %v1079_v59  ;;  %v1247_v11 = vadd.f32 %v1246_v9, %v1079_v59  ;;  %v1175_v12 = vpop.f32.mrb[43].mxu0  ;;  %v1248_v13 = vpop.f32.mrb[43].mxu1  ;;  %1356 = vmatpush1.bf16.msra.mxu0 %v1301_v60  ;;  %1409 = vmatpush1.bf16.msra.mxu1 %v1303_v61  ;;  %v1277_v16 = vmax.f32 %v1170_v2, 0.0  ;;  %v1279_v18 = vmax.f32 %v1243_v3, 0.0  ;;  %v2059_v60 = vld [vmem:[%s2531_s5 + $0x8] sm:$0xff]  }
 0x239   : > { %v1176_v14 = vadd.f32 %v1175_v12, %v1079_v59  ;;  %v1249_v15 = vadd.f32 %v1248_v13, %v1079_v59  ;;  %v1278_v21 = vmax.f32 %v1172_v6, 0.0  ;;  %v1280_v22 = vmax.f32 %v1245_v7, 0.0  ;;  %v2058_v59 = vld [vmem:[%s2531_s5] sm:$0xff]   ;;  %v1320_v61 = vpop.permute.xlu0 %1319  ;;  %v1325_v62 = vpop.permute.xlu1 %1324 }
 0x23a   : > { %v1281_v19 = vmax.f32 %v1174_v10, 0.0  ;;  %v1283_v20 = vmax.f32 %v1247_v11, 0.0 }
 0x23b   : > { %v1282_v23 = vmax.f32 %v1176_v14, 0.0  ;;  %v1284_v24 = vmax.f32 %v1249_v15, 0.0 }
 0x23c   : > { %v1305_v27 = vpack.c.bf16 %v1281_v19, %v1277_v16  ;;  %v1307_v28 = vpack.c.bf16 %v1283_v20, %v1279_v18 }
 0x23d   : > { %v1306_v29 = vpack.c.bf16 %v1282_v23, %v1278_v21  ;;  %v1308_v30 = vpack.c.bf16 %v1284_v24, %v1280_v22  ;;  %v1179_v31 = vpop.f32.mrb[44].mxu0  ;;  %v1252_v32 = vpop.f32.mrb[44].mxu1 }
 0x23e   : > { %v1180_v33 = vadd.f32 %v1179_v31, %v1084_v25  ;;  %v1253_v34 = vadd.f32 %v1252_v32, %v1084_v25  ;;  %v1181_v35 = vpop.f32.mrb[45].mxu0  ;;  %v1254_v36 = vpop.f32.mrb[45].mxu1 }
 0x23f   : > { %v1182_v37 = vadd.f32 %v1181_v35, %v1084_v25  ;;  %v1255_v38 = vadd.f32 %v1254_v36, %v1084_v25  ;;  %v1183_v39 = vpop.f32.mrb[46].mxu0  ;;  %v1256_v40 = vpop.f32.mrb[46].mxu1  ;;  %1357 = vmatprep.subr.bf16.mxu0 %v1306_v29  ;;  %1410 = vmatprep.subr.bf16.mxu1 %v1308_v30 }
 0x240   : > { %v1184_v41 = vadd.f32 %v1183_v39, %v1089_v26  ;;  %v1257_v42 = vadd.f32 %v1256_v40, %v1089_v26  ;;  %v1185_v43 = vpop.f32.mrb[47].mxu0  ;;  %v1258_v44 = vpop.f32.mrb[47].mxu1  ;;  %1358 = vmatpush1.bf16.msra.mxu0 %v1305_v27  ;;  %1411 = vmatpush1.bf16.msra.mxu1 %v1307_v28  ;;  %v1285_v47 = vmax.f32 %v1180_v33, 0.0  ;;  %v1287_v48 = vmax.f32 %v1253_v34, 0.0 }
 0x241   : > { %v1186_v45 = vadd.f32 %v1185_v43, %v1089_v26  ;;  %v1259_v46 = vadd.f32 %v1258_v44, %v1089_v26  ;;  %v1286_v51 = vmax.f32 %v1182_v37, 0.0  ;;  %v1288_v52 = vmax.f32 %v1255_v38, 0.0  ;;  %v1330_v23 = vpop.permute.xlu0 %1329  ;;  %v1335_v24 = vpop.permute.xlu1 %1334 }
 0x242   : > { %v1289_v49 = vmax.f32 %v1184_v41, 0.0  ;;  %v1291_v50 = vmax.f32 %v1257_v42, 0.0 }
 0x243   : > { %v1290_v53 = vmax.f32 %v1186_v45, 0.0  ;;  %v1292_v54 = vmax.f32 %v1259_v46, 0.0 }
 0x244   : > { %v1309_v55 = vpack.c.bf16 %v1289_v49, %v1285_v47  ;;  %v1311_v56 = vpack.c.bf16 %v1291_v50, %v1287_v48 }
 0x245   : > { %v1310_v57 = vpack.c.bf16 %v1290_v53, %v1286_v51  ;;  %v1312_v58 = vpack.c.bf16 %v1292_v54, %v1288_v52 }
 0x247   : > { %1359 = vmatprep.subr.bf16.mxu0 %v1310_v57  ;;  %1412 = vmatprep.subr.bf16.mxu1 %v1312_v58  ;;  %v2060_v57 = vld [vmem:[%s2533_s7] sm:$0xff]   ;;  %v2142_v58 = vmov 0.0  }
 0x248   : > { %1360 = vmatpush1.bf16.msra.mxu0 %v1309_v55  ;;  %1413 = vmatpush1.bf16.msra.mxu1 %v1311_v56 }
 0x24b   : > { %1950 = vmatmul.mubr.msk.bf16.vlgmr.msra.gmra.mrb[48].mxu0 %vm688_vm0, %v2058_v59  ;;  %1952 = vmatmul.mubr.msk.bf16.vlgmr.msra.gmra.mrb[48].mxu1 %vm688_vm0, %v2058_v59  ;;  %v1490_v59 = vpop.permute.xlu0 %1489 }
 0x24c   : > { %1395 = vmatprep.mubr.bf16.mxu0 %v2141_v17  ;;  %1448 = vmatprep.mubr.bf16.mxu1 %v2141_v17 }
 0x253   : > { %1951 = vmatmul.mubr.msk.bf16.gmra.mrb[52].mxu0 %vm688_vm0, %v2059_v60  ;;  %1953 = vmatmul.mubr.msk.bf16.gmra.mrb[52].mxu1 %vm688_vm0, %v2059_v60  ;;  %v1495_v60 = vpop.permute.xlu1 %1494 }
 0x254   : > { %1538 = vmatprep.mubr.bf16.mxu0 %v2141_v17  ;;  %1581 = vmatprep.mubr.bf16.mxu1 %v2141_v17 }
 0x31e   : > { %v1387_v63 = vpop.f32.mrb[48].mxu0  ;;  %v1440_v0 = vpop.f32.mrb[48].mxu1 }
 0x31f   : > { %v1388_v1 = vadd.f32 %v1387_v63, %v1320_v61  ;;  %v1441_v2 = vadd.f32 %v1440_v0, %v1320_v61  ;;  %v1389_v3 = vpop.f32.mrb[49].mxu0  ;;  %v1442_v4 = vpop.f32.mrb[49].mxu1 }
 0x320   : > { %v1390_v5 = vadd.f32 %v1389_v3, %v1320_v61  ;;  %v1443_v6 = vadd.f32 %v1442_v4, %v1320_v61  ;;  %v1391_v7 = vpop.f32.mrb[50].mxu0  ;;  %v1444_v8 = vpop.f32.mrb[50].mxu1 }
 0x321   : > { %v1392_v9 = vadd.f32 %v1391_v7, %v1325_v62  ;;  %v1445_v10 = vadd.f32 %v1444_v8, %v1325_v62  ;;  %v1393_v11 = vpop.f32.mrb[51].mxu0  ;;  %v1446_v12 = vpop.f32.mrb[51].mxu1  ;;  %v1459_v15 = vmax.f32 %v1388_v1, 0.0  ;;  %v1461_v17 = vmax.f32 %v1441_v2, 0.0 }
 0x322   : > { %v1394_v13 = vadd.f32 %v1393_v11, %v1325_v62  ;;  %v1447_v14 = vadd.f32 %v1446_v12, %v1325_v62  ;;  %v1460_v19 = vmax.f32 %v1390_v5, 0.0  ;;  %v1462_v20 = vmax.f32 %v1443_v6, 0.0 }
 0x323   : > { %v1463_v16 = vmax.f32 %v1392_v9, 0.0  ;;  %v1465_v18 = vmax.f32 %v1445_v10, 0.0 }
 0x324   : > { %v1464_v21 = vmax.f32 %v1394_v13, 0.0  ;;  %v1466_v22 = vmax.f32 %v1447_v14, 0.0 }
 0x325   : > { %v1477_v25 = vpack.c.bf16 %v1463_v16, %v1459_v15  ;;  %v1479_v26 = vpack.c.bf16 %v1465_v18, %v1461_v17 }
 0x326   : > { %v1478_v27 = vpack.c.bf16 %v1464_v21, %v1460_v19  ;;  %v1480_v28 = vpack.c.bf16 %v1466_v22, %v1462_v20  ;;  %v1397_v29 = vpop.f32.mrb[52].mxu0  ;;  %v1450_v30 = vpop.f32.mrb[52].mxu1 }
 0x327   : > { %v1398_v31 = vadd.f32 %v1397_v29, %v1330_v23  ;;  %v1451_v32 = vadd.f32 %v1450_v30, %v1330_v23  ;;  %v1399_v33 = vpop.f32.mrb[53].mxu0  ;;  %v1452_v34 = vpop.f32.mrb[53].mxu1 }
 0x328   : > { %v1400_v35 = vadd.f32 %v1399_v33, %v1330_v23  ;;  %v1453_v36 = vadd.f32 %v1452_v34, %v1330_v23  ;;  %v1401_v37 = vpop.f32.mrb[54].mxu0  ;;  %v1454_v38 = vpop.f32.mrb[54].mxu1  ;;  %1506 = vmatprep.subr.bf16.mxu0 %v1478_v27  ;;  %1549 = vmatprep.subr.bf16.mxu1 %v1480_v28 }
 0x329   : > { %v1402_v39 = vadd.f32 %v1401_v37, %v1335_v24  ;;  %v1455_v40 = vadd.f32 %v1454_v38, %v1335_v24  ;;  %v1403_v41 = vpop.f32.mrb[55].mxu0  ;;  %v1456_v42 = vpop.f32.mrb[55].mxu1  ;;  %1507 = vmatpush1.bf16.msra.mxu0 %v1477_v25  ;;  %1550 = vmatpush1.bf16.msra.mxu1 %v1479_v26  ;;  %v1467_v45 = vmax.f32 %v1398_v31, 0.0  ;;  %v1469_v46 = vmax.f32 %v1451_v32, 0.0  ;;  %v1600_v25 = vld [vmem:[%s2535_s9] sm:$0x1] }
 0x32a   : > { %v1404_v43 = vadd.f32 %v1403_v41, %v1335_v24  ;;  %v1457_v44 = vadd.f32 %v1456_v42, %v1335_v24  ;;  %v1468_v49 = vmax.f32 %v1400_v35, 0.0  ;;  %v1470_v50 = vmax.f32 %v1453_v36, 0.0  ;;  %v1605_v29 = vpop.permute.xlu0 %1604 }
 0x32b   : > { %v1471_v47 = vmax.f32 %v1402_v39, 0.0  ;;  %v1473_v48 = vmax.f32 %v1455_v40, 0.0  ;;  %v1607_v26 = vlaneseq }
 0x32c   : > { %v1472_v51 = vmax.f32 %v1404_v43, 0.0  ;;  %v1474_v52 = vmax.f32 %v1457_v44, 0.0 }
 0x32d   : > { %v1481_v53 = vpack.c.bf16 %v1471_v47, %v1467_v45  ;;  %v1483_v54 = vpack.c.bf16 %v1473_v48, %v1469_v46  ;;  %v1608_v27 = vshrl.u32 %v1607_v26, 7  ;;  %vm1812_vm3 = vcmp.lt.s32.totalorder %v1607_v26, 512 }
 0x32e   : > { %v1482_v55 = vpack.c.bf16 %v1472_v51, %v1468_v49  ;;  %v1484_v56 = vpack.c.bf16 %v1474_v52, %v1470_v50  ;;  %v2143_v51 = vmov 1966171168  }
 0x32f   : > { %v1609_v28 = vsub.s32 0, %v1608_v27  ;;  %v1788_v52 = vunpack.c.l.s4 %v2143_v51 }
 0x330   : > { %1508 = vmatprep.subr.bf16.mxu0 %v1482_v55  ;;  %1551 = vmatprep.subr.bf16.mxu1 %v1484_v56 }
 0x331   : > { %1509 = vmatpush1.bf16.msra.mxu0 %v1481_v53  ;;  %1552 = vmatpush1.bf16.msra.mxu1 %v1483_v54  ;;  %v1610_v30 = vrot.slane %v1605_v29, %v1609_v28  ;;  %v1789_v53 = vunpack.c.0.s8 %v1788_v52 }
 0x333   : > { %v1792_v56 = vsub.s32 %v1789_v53, %v1608_v27 }
 0x334   : > { %1955 = vmatmul.mubr.msk.bf16.vlgmr.msra.gmra.mrb[56].mxu0 %vm1502_vm1, %v2060_v57  ;;  %1956 = vmatmul.mubr.msk.bf16.vlgmr.msra.gmra.mrb[56].mxu1 %vm1502_vm1, %v2060_v57 }
 0x335   : > { %1679 = vmatprep.mubr.f32.mxu0 %v2142_v58  ;;  %1750 = vmatprep.mubr.f32.mxu1 %v2142_v58 }
 0x407   : > { %v1540_v61 = vpop.f32.mrb[56].mxu0  ;;  %v1583_v62 = vpop.f32.mrb[56].mxu1 }
 0x408   : > { %v1541_v63 = vadd.f32 %v1540_v61, %v1490_v59  ;;  %v1584_v0 = vadd.f32 %v1583_v62, %v1490_v59  ;;  %v1542_v1 = vpop.f32.mrb[57].mxu0  ;;  %v1585_v2 = vpop.f32.mrb[57].mxu1 }
 0x409   : > { %v1543_v3 = vadd.f32 %v1542_v1, %v1490_v59  ;;  %v1586_v4 = vadd.f32 %v1585_v2, %v1490_v59  ;;  %v1544_v5 = vpop.f32.mrb[58].mxu0  ;;  %v1587_v6 = vpop.f32.mrb[58].mxu1 }
 0x40a   : > { %v1545_v7 = vadd.f32 %v1544_v5, %v1495_v60  ;;  %v1588_v8 = vadd.f32 %v1587_v6, %v1495_v60  ;;  %v1546_v9 = vpop.f32.mrb[59].mxu0  ;;  %v1589_v10 = vpop.f32.mrb[59].mxu1  ;;  %v1592_v13 = vmax.f32 %v1541_v63, 0.0  ;;  %v1594_v14 = vmax.f32 %v1584_v0, 0.0 }
 0x40b   : > { %v1547_v11 = vadd.f32 %v1546_v9, %v1495_v60  ;;  %v1590_v12 = vadd.f32 %v1589_v10, %v1495_v60  ;;  %v1593_v16 = vmax.f32 %v1543_v3, 0.0  ;;  %v1595_v18 = vmax.f32 %v1586_v4, 0.0 }
 0x40c   : > { %v1596_v15 = vmax.f32 %v1545_v7, 0.0  ;;  %v1598_v17 = vmax.f32 %v1588_v8, 0.0 }
 0x40d   : > { %v1597_v19 = vmax.f32 %v1547_v11, 0.0  ;;  %v1599_v20 = vmax.f32 %v1590_v12, 0.0 }
 0x40e   : > { %v1972_v21 = vpack.c.bf16 %v1596_v15, %v1592_v13  ;;  %v1976_v22 = vpack.c.bf16 %v1598_v17, %v1594_v14 }
 0x40f   : > { %v1970_v23 = vpack.c.bf16 %v1597_v19, %v1593_v16  ;;  %v1974_v24 = vpack.c.bf16 %v1599_v20, %v1595_v18 }
 0x411   : > { %1971 = vmatprep.subr.bf16.mxu0 %v1970_v23  ;;  %1975 = vmatprep.subr.bf16.mxu1 %v1974_v24 }
 0x412   : > { %1973 = vmatpush1.bf16.msra.mxu0 %v1972_v21  ;;  %1977 = vmatpush1.bf16.msra.mxu1 %v1976_v22 }
 0x415   : > { %1957 = vmatmul.mubr.msk.f32.vlgmr.msra.gmra.mrb[60].mxu0 %vm1611_vm2, %v1600_v25  ;;  %1958 = vmatmul.mubr.msk.f32.vlgmr.msra.gmra.mrb[60].mxu1 %vm1611_vm2, %v1600_v25 }
 0x4e8   : > { %v1681_v31 = vpop.f32.mrb[60].mxu0  ;;  %v1752_v32 = vpop.f32.mrb[60].mxu1 }
 0x4e9   : > { %v1682_v33 = vadd.f32 %v1681_v31, %v1610_v30  ;;  %v1753_v34 = vadd.f32 %v1752_v32, %v1610_v30  ;;  %v1683_v35 = vpop.f32.mrb[61].mxu0  ;;  %v1754_v36 = vpop.f32.mrb[61].mxu1 }
 0x4ea   : > { %v1684_v37 = vadd.f32 %v1683_v35, %v1610_v30  ;;  %v1755_v38 = vadd.f32 %v1754_v36, %v1610_v30 }
 0x4eb   : > { %v1959_v39 = vmul.f32 -1.442695, %v1682_v33  ;;  %v1961_v40 = vmul.f32 -1.442695, %v1753_v34 }
 0x4ec   : > { %v1960_v41 = vmul.f32 -1.442695, %v1684_v37  ;;  %v1962_v42 = vmul.f32 -1.442695, %v1755_v38 }
 0x4ed   : > { %2061 = vpow2.f32 %v1959_v39 }
 0x4ee   : > { %2063 = vpow2.f32 %v1961_v40 }
 0x4ef   : > { %2065 = vpow2.f32 %v1960_v41 }
 0x4f0   : > { %2067 = vpow2.f32 %v1962_v42 }
 0x4f7   : > { %v2062_v43 = vpop.eup %2061 }
 0x4f8   : > { %v2064_v44 = vpop.eup %2063  ;;  %v1769_v45 = vadd.f32 1.0, %v2062_v43 }
 0x4f9   : > { %v2066_v46 = vpop.eup %2065  ;;  %v1771_v47 = vadd.f32 1.0, %v2064_v44 }
 0x4fa   : > { %v2068_v48 = vpop.eup %2067  ;;  %2069 = vrcp.f32 %v1769_v45  ;;  %v1770_v49 = vadd.f32 1.0, %v2066_v46 }
 0x4fb   : > { %2071 = vrcp.f32 %v1771_v47  ;;  %v1772_v50 = vadd.f32 1.0, %v2068_v48 }
 0x4fc   : > { %2073 = vrcp.f32 %v1770_v49 }
 0x4fd   : > { %2075 = vrcp.f32 %v1772_v50 }
 0x504   : > { %v2070_v54 = vpop.eup %2069 }
 0x505   : > { %v2072_v55 = vpop.eup %2071 }
 0x506   : > { %v2074_v57 = vpop.eup %2073 }
 0x507   : > { %v2076_v58 = vpop.eup %2075  ;;  %v1785_v59 = vcombine.low %v2070_v54, %v2074_v57 }
 0x508   : > { %v1786_v60 = vcombine.low %v2072_v55, %v2076_v58 }
 0x509   : > { %v1793_v61 = vrot.slane %v1785_v59, %v1792_v56 }
 0x50a   : > { %v1800_v62 = vrot.slane %v1786_v60, %v1792_v56 }
 0x50c   : > { %v1801_v63 = vcombine.low %v1793_v61, %v1800_v62 }
 0x50e   : > { %v1808_v0 = vrot.slane %v1801_v63, %v1792_v56 }
 0x510   : > { %1814 = vst.msk [vmem:[%s436_s14] sm:$0xf] %vm1812_vm3, %v1808_v0 }
 0x511   : > { %2090 = shalt.err (!%p2087_p5)
}
 0x512   : > { %s2091_s18 = scalar_lea.hbm %s2482_s23, 64  ;;  %s2095_s16 = scalar_lea.hbm %s2537_s11, 128 }
 0x513   : > { %p2092_p7 = scmp.ne.s32.totalorder %s2482_s23, %s2091_s18  ;;  %p2096_p12 = scmp.lt.u32.totalorder %s2482_s23, %s2537_s11 }
 0x514   : > { %p2097_p13 = scmp.lt.u32.totalorder %s2095_s16, %s2091_s18  ;;  %p2099_p1 = scmp.lt.u32.totalorder %s2091_s18, %s2482_s23 }
 0x515   : > { %p2093_p10 = pnand %p2092_p7, %p2246_p6 }
 0x516   : > { %p2098_p0 = por %p2097_p13, %p2096_p12 }
 0x517   : > { %p2094_p11 = pneg %p2093_p10 }
 0x518   : > { %p2100_p2 = por %p2099_p1, %p2098_p0 }
 0x51a   : > { %p2101_p3 = pnand %p2100_p2, %p2094_p11 }
 0x51c   : > { %2104 = shalt.err (!%p2101_p3)
}
 0x51d   : > { %1978 = dma.vmem_to_hbm [thread:$0]  (%p2246_p6), %s2484_s15, 64, %s2482_s23, %s1816_s25  }
 0x51e PF: > { %s1842_s26 = sand.u32 1, %s2127_s19   ;;  %p1981_p4 = pnand %p1897_p9, %p2250_p8 }
 0x51f   : > { %s1843_s30 = scalar_lea.sflag [#allocation5], %s1842_s26 }
 0x520   : > { %2122 = dma.done.wait (!%p1981_p4), %s1843_s30, 64  }
 0x521   : > { %2124 = vsyncadd (!%p1981_p4), %s1843_s30, 4294967232  ;;  %p23_p5 = scmp.ge.s32.totalorder %s2231_s24, 4   ;;  %s2540_s19 = smov %s2131_s20 }
 0x522   : > { %s2541_s20 = smov %s2135_s21  ;;  %s2542_s21 = smov %s2244_s27 }
 0x523   : > { %s2543_s22 = smov %s2231_s24  ;;  %25 = sbr.rel (!%p23_p5) target bundleno = 6 (0x6), region = 127 }
 0x52a   :  { %1848 = vsyncpa [#allocation5], 1 }
 0x52b   :  { %1850 = vsyncpa [#allocation5 + $0x1], 1 }

</bundles_post_ra>
